<compile_context>
chip_gen: v7x
topology: tpu7x:2x2x1
jax: 0.10.0
libtpu: 0.0.40
codegen_flags: <defaults>
</compile_context>

<pallas_src>
import functools

import jax
import jax.numpy as jnp
from jax import lax
from jax.experimental import pallas as pl
from jax.experimental.pallas import tpu as pltpu


def _tap_valid_range(k_off, p, s, in_size, out_size):
    """Inclusive [lo, hi] range of output positions whose source index
    (k_off - p + i*s) falls inside [0, in_size).  Trace-time Python ints."""
    lo = max(0, -((k_off - p) // s))                        # ceil((p - k_off)/s)
    hi = min(out_size - 1, (in_size - 1 - k_off + p) // s)
    return lo, hi


def _convblock_kernel(x_ref, w_ref, shift_ref, *rest, k, s, p, h_out, w_out, linear):
    """One grid step = B_blk images.

    x_ref:     (B_blk, H, W, C_in)              unpadded NHWC input block, bf16
    w_ref:     (C_out, k*k*C_in)                BN-scale-folded weights, bf16 (resident)
    shift_ref: (C_out, 1)                       BN shift, f32 (resident)
    alpha_ref: (C_out, 1)                       PReLU slope, f32 (only when not linear)
    o_ref:     (B_blk, C_out, H_out*W_out)      output block (lane-dense last dim)
    patch_ref: (B_blk, H_out, W_out, k*k*C_in)  im2col scratch, bf16
    """
    if linear:
        o_ref, patch_ref = rest
    else:
        alpha_ref, o_ref, patch_ref = rest

    b_blk, h, w, c_in = x_ref.shape
    kk_cin = w_ref.shape[1]
    m_per = h_out * w_out

    # In-kernel zero padding: halo entries of boundary taps stay zero.  Re-zeroed
    # every step so correctness never depends on scratch persistence when the
    # "parallel" grid axis is split across TensorCores.
    patch_ref[...] = jnp.zeros_like(patch_ref)

    # Pack all k*k shifted taps with pure rectangular slice copies (no reshape,
    # no per-tap matmul, no per-tap accumulator add).
    for kh in range(k):
        i_lo, i_hi = _tap_valid_range(kh, p, s, h, h_out)
        ni = i_hi - i_lo + 1
        src_i = kh - p + i_lo * s
        for kw in range(k):
            j_lo, j_hi = _tap_valid_range(kw, p, s, w, w_out)
            nj = j_hi - j_lo + 1
            src_j = kw - p + j_lo * s
            if ni <= 0 or nj <= 0:
                continue
            t = kh * k + kw
            if s == 1:
                win = x_ref[:, pl.ds(src_i, ni), pl.ds(src_j, nj), :]
            else:
                # TODO(synk): s > 1 (strided tap reads) follows pl.ds stride
                # semantics but is not exercised by the tests below.
                win = x_ref[:, pl.ds(src_i, ni, s), pl.ds(src_j, nj, s), :]
            patch_ref[:, pl.ds(i_lo, ni), pl.ds(j_lo, nj), pl.ds(t * c_in, c_in)] = win

    # Single MXU contraction per grid step: K = k*k*C_in contracted, batch folded
    # into the lane dimension m = B_blk*H_out*W_out, f32 accumulation.
    pk = patch_ref[...].reshape(b_blk * m_per, kk_cin)      # leading-dim fold only
    y = lax.dot_general(
        w_ref[...], pk,
        dimension_numbers=(((1,), (1,)), ((), ())),
        preferred_element_type=jnp.float32)                 # (C_out, B_blk*m_per)

    y = y + shift_ref[...]                                  # fused BN shift (scale folded into W)
    if not linear:
        a = alpha_ref[...]
        y = jnp.where(y > 0, y, a * y)                      # per-channel PReLU
    y = y.astype(o_ref.dtype)

    # Lane-dense (C_out, m_per) stores, already in NCHW order per image.
    for b in range(b_blk):
        o_ref[b] = y[:, b * m_per:(b + 1) * m_per]


def _pick_batch_block(n, max_block=8):
    """Largest divisor of n that is <= max_block while keeping >= 2 grid steps
    (so both v7x TensorCores get work) whenever n >= 2."""
    cap = max(1, min(max_block, n if n < 2 else n // 2))
    for b in range(cap, 0, -1):
        if n % b == 0:
            return b
    return 1


@functools.partial(jax.jit,
                   static_argnames=("k", "s", "p", "dw", "linear", "out_dtype"))
def conv_block_forward(x, conv_w, bn_gamma, bn_beta, bn_mean, bn_var, prelu_a=None,
                       *, k, s, p, dw=False, linear=False, eps=1e-5,
                       out_dtype=jnp.bfloat16):
    """ConvBlock forward.  x: NCHW float32.  conv_w: (C_out, C_in, k, k)."""
    if dw:
        # TODO(synk): depthwise / grouped conv (dw=True) not implemented.
        raise NotImplementedError("ConvBlock Pallas kernel: dw=True not supported")

    N, C_in, H, W = x.shape
    C_out = conv_w.shape[0]
    H_out = (H + 2 * p - k) // s + 1
    W_out = (W + 2 * p - k) // s + 1
    M = H_out * W_out
    KK = k * k * C_in
    B_blk = _pick_batch_block(N)

    # NCHW -> NHWC + bf16 cast only (no HBM padding pass; padding happens in-kernel).
    x_nhwc = jnp.transpose(x, (0, 2, 3, 1)).astype(jnp.bfloat16)

    # Conv-BN fusion: fold the BN scale into the weights; keep only the shift.
    scale = bn_gamma / jnp.sqrt(bn_var + eps)                               # (C_out,)
    w_fold = conv_w * scale[:, None, None, None]                            # (C_out,C_in,k,k)
    w2 = (w_fold.transpose(0, 2, 3, 1)                                      # (C_out,k,k,C_in)
          .reshape(C_out, KK).astype(jnp.bfloat16))                         # (C_out,k*k*C_in)
    shift = (bn_beta - bn_mean * scale).reshape(C_out, 1).astype(jnp.float32)

    kern = functools.partial(_convblock_kernel, k=k, s=s, p=p,
                             h_out=H_out, w_out=W_out, linear=linear)

    in_specs = [
        pl.BlockSpec((B_blk, H, W, C_in), lambda n: (n, 0, 0, 0)),   # batch block of images
        pl.BlockSpec((C_out, KK), lambda n: (0, 0)),                 # VMEM-resident weights
        pl.BlockSpec((C_out, 1), lambda n: (0, 0)),                  # VMEM-resident shift
    ]
    args = [x_nhwc, w2, shift]
    if not linear:
        a = jnp.broadcast_to(jnp.asarray(prelu_a, jnp.float32).reshape(-1), (C_out,))
        in_specs.append(pl.BlockSpec((C_out, 1), lambda n: (0, 0)))  # VMEM-resident alpha
        args.append(a.reshape(C_out, 1))

    out = pl.pallas_call(
        kern,
        out_shape=jax.ShapeDtypeStruct((N, C_out, M), out_dtype),
        grid_spec=pltpu.PrefetchScalarGridSpec(
            num_scalar_prefetch=0,
            grid=(N // B_blk,),
            in_specs=in_specs,
            out_specs=pl.BlockSpec((B_blk, C_out, M), lambda n: (n, 0, 0)),
            scratch_shapes=[pltpu.VMEM((B_blk, H_out, W_out, KK), jnp.bfloat16)],
        ),
        compiler_params=pltpu.CompilerParams(
            dimension_semantics=("parallel",)),
    )(*args)

    # (N, C_out, H_out*W_out) -> NCHW: metadata-only reshape (no transpose pass).
    return out.reshape(N, C_out, H_out, W_out)


def _reference_f32(x, conv_w, bn_gamma, bn_beta, bn_mean, bn_var, prelu_a,
                   *, k, s, p, linear=False, eps=1e-5):
    """Pure f32 reference matching the PyTorch module (inference BN)."""
    y = lax.conv_general_dilated(
        x, conv_w, window_strides=(s, s), padding=((p, p), (p, p)),
        dimension_numbers=("NCHW", "OIHW", "NCHW"))
    scale = (bn_gamma / jnp.sqrt(bn_var + eps))[None, :, None, None]
    shift = (bn_beta - bn_mean * bn_gamma / jnp.sqrt(bn_var + eps))[None, :, None, None]
    y = y * scale + shift
    if linear:
        return y
    a = prelu_a[None, :, None, None]
    return jnp.where(y > 0, y, a * y)


def _reference_bf16_matched(x, conv_w, bn_gamma, bn_beta, bn_mean, bn_var, prelu_a,
                            *, k, s, p, linear=False, eps=1e-5):
    """Reference using the same bf16 quantization + BN-fused weights as the kernel."""
    scale = bn_gamma / jnp.sqrt(bn_var + eps)
    w_fold = (conv_w * scale[:, None, None, None]).astype(jnp.bfloat16)
    xb = x.astype(jnp.bfloat16)
    y = lax.conv_general_dilated(
        xb, w_fold, window_strides=(s, s), padding=((p, p), (p, p)),
        dimension_numbers=("NCHW", "OIHW", "NCHW"),
        preferred_element_type=jnp.float32)
    shift = (bn_beta - bn_mean * scale)[None, :, None, None]
    y = y + shift
    if linear:
        return y
    a = prelu_a[None, :, None, None]
    return jnp.where(y > 0, y, a * y)


if __name__ == "__main__":
    # ConvBlock(inp=4, oup=8, k=3, s=1, p=1, dw=False, linear=False)
    inp, oup, k, s, p = 4, 8, 3, 1, 1
    N, H, W = 2, 16, 16

    key = jax.random.PRNGKey(0)
    k0, k1, k2, k3, k4, k5 = jax.random.split(key, 6)

    x        = jax.random.normal(k0, (N, inp, H, W), jnp.float32)
    conv_w   = jax.random.normal(k1, (oup, inp, k, k), jnp.float32) * 0.1
    bn_gamma = 1.0 + 0.1 * jax.random.normal(k2, (oup,), jnp.float32)
    bn_beta  = 0.1 * jax.random.normal(k3, (oup,), jnp.float32)
    bn_mean  = 0.1 * jax.random.normal(k4, (oup,), jnp.float32)
    bn_var   = jax.random.uniform(k5, (oup,), jnp.float32, 0.5, 1.5)
    prelu_a  = jnp.full((oup,), 0.25, jnp.float32)   # PyTorch PReLU default init

    # PReLU path (bf16 output, f32 accumulation).
    out = conv_block_forward(x, conv_w, bn_gamma, bn_beta, bn_mean, bn_var,
                             prelu_a, k=k, s=s, p=p, linear=False)
    out = jax.block_until_ready(out)
    assert out.shape == (N, oup, H, W)
    assert out.dtype == jnp.bfloat16
    out_f = out.astype(jnp.float32)

    ref_m = _reference_bf16_matched(x, conv_w, bn_gamma, bn_beta, bn_mean, bn_var,
                                    prelu_a, k=k, s=s, p=p, linear=False)
    ref_m_q = ref_m.astype(jnp.bfloat16).astype(jnp.float32)
    assert jnp.allclose(out_f, ref_m_q, rtol=2e-2, atol=2e-2), "mismatch vs bf16-matched reference"

    ref_f = _reference_f32(x, conv_w, bn_gamma, bn_beta, bn_mean, bn_var,
                           prelu_a, k=k, s=s, p=p, linear=False)
    assert jnp.allclose(out_f, ref_f, rtol=6e-2, atol=6e-2), "mismatch vs f32 module reference"

    # linear=True variant (separate kernel: no PReLU select, no alpha operand),
    # with f32 output to exercise the out_dtype parameter.
    out_lin = conv_block_forward(x, conv_w, bn_gamma, bn_beta, bn_mean, bn_var,
                                 prelu_a, k=k, s=s, p=p, linear=True,
                                 out_dtype=jnp.float32)
    out_lin = jax.block_until_ready(out_lin)
    ref_lin = _reference_bf16_matched(x, conv_w, bn_gamma, bn_beta, bn_mean, bn_var,
                                      prelu_a, k=k, s=s, p=p, linear=True)
    assert jnp.allclose(out_lin, ref_lin, rtol=5e-3, atol=5e-3), "mismatch (linear variant)"

    print("KERNEL_OK")
</pallas_src>

<mosaic_0001>
module attributes {stable_mosaic.version = 11 : i64} {
  func.func @_convblock_kernel(%arg0: i32, %arg1: memref<1x16x16x4xbf16, #tpu.memory_space<vmem>>, %arg2: memref<8x36xbf16, #tpu.memory_space<vmem>>, %arg3: memref<8x1xf32, #tpu.memory_space<vmem>>, %arg4: memref<8x1xf32, #tpu.memory_space<vmem>>, %arg5: memref<1x8x256xbf16, #tpu.memory_space<vmem>>, %arg6: memref<1x16x16x36xbf16, #tpu.memory_space<vmem>>) attributes {dimension_semantics = [#tpu.dimension_semantics<parallel>], iteration_bounds = array<i64: 2>, scalar_prefetch = 0 : i64, scratch_operands = 1 : i64, tpu.core_type = #tpu.core_type<tc>, window_params = [{transform_indices = @transform_0, window_bounds = array<i64: 1, 16, 16, 4>}, {pipeline_mode = #tpu.pipeline_mode<synchronous>, transform_indices = @transform_1, window_bounds = array<i64: 8, 36>}, {pipeline_mode = #tpu.pipeline_mode<synchronous>, transform_indices = @transform_2, window_bounds = array<i64: 8, 1>}, {pipeline_mode = #tpu.pipeline_mode<synchronous>, transform_indices = @transform_3, window_bounds = array<i64: 8, 1>}, {transform_indices = @transform_4, window_bounds = array<i64: 1, 8, 256>}]} {
    %cst = arith.constant 0.000000e+00 : bf16
    %0 = vector.broadcast %cst : bf16 to vector<1x16x16x36xbf16>
    %c0 = arith.constant 0 : index
    %c0_0 = arith.constant 0 : index
    %c0_1 = arith.constant 0 : index
    %c0_2 = arith.constant 0 : index
    %1 = vector.load %arg6[%c0, %c0_0, %c0_1, %c0_2] : memref<1x16x16x36xbf16, #tpu.memory_space<vmem>>, vector<1x16x16x36xbf16>
    tpu.vector_store %arg6[%c0, %c0_0, %c0_1, %c0_2], %0 {strides = array<i32>} : memref<1x16x16x36xbf16, #tpu.memory_space<vmem>>, vector<1x16x16x36xbf16>,
    %c0_3 = arith.constant 0 : index
    %c0_4 = arith.constant 0 : index
    %c0_5 = arith.constant 0 : index
    %c0_6 = arith.constant 0 : index
    %2 = vector.load %arg1[%c0_3, %c0_4, %c0_5, %c0_6] : memref<1x16x16x4xbf16, #tpu.memory_space<vmem>>, vector<1x15x15x4xbf16>
    %c0_7 = arith.constant 0 : index
    %c1 = arith.constant 1 : index
    %c1_8 = arith.constant 1 : index
    %c0_9 = arith.constant 0 : index
    %3 = vector.load %arg6[%c0_7, %c1, %c1_8, %c0_9] : memref<1x16x16x36xbf16, #tpu.memory_space<vmem>>, vector<1x15x15x4xbf16>
    tpu.vector_store %arg6[%c0_7, %c1, %c1_8, %c0_9], %2 {strides = array<i32>} : memref<1x16x16x36xbf16, #tpu.memory_space<vmem>>, vector<1x15x15x4xbf16>,
    %c0_10 = arith.constant 0 : index
    %c0_11 = arith.constant 0 : index
    %c0_12 = arith.constant 0 : index
    %c0_13 = arith.constant 0 : index
    %4 = vector.load %arg1[%c0_10, %c0_11, %c0_12, %c0_13] : memref<1x16x16x4xbf16, #tpu.memory_space<vmem>>, vector<1x15x16x4xbf16>
    %c0_14 = arith.constant 0 : index
    %c1_15 = arith.constant 1 : index
    %c0_16 = arith.constant 0 : index
    %c4 = arith.constant 4 : index
    %5 = vector.load %arg6[%c0_14, %c1_15, %c0_16, %c4] : memref<1x16x16x36xbf16, #tpu.memory_space<vmem>>, vector<1x15x16x4xbf16>
    tpu.vector_store %arg6[%c0_14, %c1_15, %c0_16, %c4], %4 {strides = array<i32>} : memref<1x16x16x36xbf16, #tpu.memory_space<vmem>>, vector<1x15x16x4xbf16>,
    %c0_17 = arith.constant 0 : index
    %c0_18 = arith.constant 0 : index
    %c1_19 = arith.constant 1 : index
    %c0_20 = arith.constant 0 : index
    %6 = vector.load %arg1[%c0_17, %c0_18, %c1_19, %c0_20] : memref<1x16x16x4xbf16, #tpu.memory_space<vmem>>, vector<1x15x15x4xbf16>
    %c0_21 = arith.constant 0 : index
    %c1_22 = arith.constant 1 : index
    %c0_23 = arith.constant 0 : index
    %c8 = arith.constant 8 : index
    %7 = vector.load %arg6[%c0_21, %c1_22, %c0_23, %c8] : memref<1x16x16x36xbf16, #tpu.memory_space<vmem>>, vector<1x15x15x4xbf16>
    tpu.vector_store %arg6[%c0_21, %c1_22, %c0_23, %c8], %6 {strides = array<i32>} : memref<1x16x16x36xbf16, #tpu.memory_space<vmem>>, vector<1x15x15x4xbf16>,
    %c0_24 = arith.constant 0 : index
    %c0_25 = arith.constant 0 : index
    %c0_26 = arith.constant 0 : index
    %c0_27 = arith.constant 0 : index
    %8 = vector.load %arg1[%c0_24, %c0_25, %c0_26, %c0_27] : memref<1x16x16x4xbf16, #tpu.memory_space<vmem>>, vector<1x16x15x4xbf16>
    %c0_28 = arith.constant 0 : index
    %c0_29 = arith.constant 0 : index
    %c1_30 = arith.constant 1 : index
    %c12 = arith.constant 12 : index
    %9 = vector.load %arg6[%c0_28, %c0_29, %c1_30, %c12] : memref<1x16x16x36xbf16, #tpu.memory_space<vmem>>, vector<1x16x15x4xbf16>
    tpu.vector_store %arg6[%c0_28, %c0_29, %c1_30, %c12], %8 {strides = array<i32>} : memref<1x16x16x36xbf16, #tpu.memory_space<vmem>>, vector<1x16x15x4xbf16>,
    %c0_31 = arith.constant 0 : index
    %c0_32 = arith.constant 0 : index
    %c0_33 = arith.constant 0 : index
    %c0_34 = arith.constant 0 : index
    %10 = vector.load %arg1[%c0_31, %c0_32, %c0_33, %c0_34] : memref<1x16x16x4xbf16, #tpu.memory_space<vmem>>, vector<1x16x16x4xbf16>
    %c0_35 = arith.constant 0 : index
    %c0_36 = arith.constant 0 : index
    %c0_37 = arith.constant 0 : index
    %c16 = arith.constant 16 : index
    %11 = vector.load %arg6[%c0_35, %c0_36, %c0_37, %c16] : memref<1x16x16x36xbf16, #tpu.memory_space<vmem>>, vector<1x16x16x4xbf16>
    tpu.vector_store %arg6[%c0_35, %c0_36, %c0_37, %c16], %10 {strides = array<i32>} : memref<1x16x16x36xbf16, #tpu.memory_space<vmem>>, vector<1x16x16x4xbf16>,
    %c0_38 = arith.constant 0 : index
    %c0_39 = arith.constant 0 : index
    %c1_40 = arith.constant 1 : index
    %c0_41 = arith.constant 0 : index
    %12 = vector.load %arg1[%c0_38, %c0_39, %c1_40, %c0_41] : memref<1x16x16x4xbf16, #tpu.memory_space<vmem>>, vector<1x16x15x4xbf16>
    %c0_42 = arith.constant 0 : index
    %c0_43 = arith.constant 0 : index
    %c0_44 = arith.constant 0 : index
    %c20 = arith.constant 20 : index
    %13 = vector.load %arg6[%c0_42, %c0_43, %c0_44, %c20] : memref<1x16x16x36xbf16, #tpu.memory_space<vmem>>, vector<1x16x15x4xbf16>
    tpu.vector_store %arg6[%c0_42, %c0_43, %c0_44, %c20], %12 {strides = array<i32>} : memref<1x16x16x36xbf16, #tpu.memory_space<vmem>>, vector<1x16x15x4xbf16>,
    %c0_45 = arith.constant 0 : index
    %c1_46 = arith.constant 1 : index
    %c0_47 = arith.constant 0 : index
    %c0_48 = arith.constant 0 : index
    %14 = vector.load %arg1[%c0_45, %c1_46, %c0_47, %c0_48] : memref<1x16x16x4xbf16, #tpu.memory_space<vmem>>, vector<1x15x15x4xbf16>
    %c0_49 = arith.constant 0 : index
    %c0_50 = arith.constant 0 : index
    %c1_51 = arith.constant 1 : index
    %c24 = arith.constant 24 : index
    %15 = vector.load %arg6[%c0_49, %c0_50, %c1_51, %c24] : memref<1x16x16x36xbf16, #tpu.memory_space<vmem>>, vector<1x15x15x4xbf16>
    tpu.vector_store %arg6[%c0_49, %c0_50, %c1_51, %c24], %14 {strides = array<i32>} : memref<1x16x16x36xbf16, #tpu.memory_space<vmem>>, vector<1x15x15x4xbf16>,
    %c0_52 = arith.constant 0 : index
    %c1_53 = arith.constant 1 : index
    %c0_54 = arith.constant 0 : index
    %c0_55 = arith.constant 0 : index
    %16 = vector.load %arg1[%c0_52, %c1_53, %c0_54, %c0_55] : memref<1x16x16x4xbf16, #tpu.memory_space<vmem>>, vector<1x15x16x4xbf16>
    %c0_56 = arith.constant 0 : index
    %c0_57 = arith.constant 0 : index
    %c0_58 = arith.constant 0 : index
    %c28 = arith.constant 28 : index
    %17 = vector.load %arg6[%c0_56, %c0_57, %c0_58, %c28] : memref<1x16x16x36xbf16, #tpu.memory_space<vmem>>, vector<1x15x16x4xbf16>
    tpu.vector_store %arg6[%c0_56, %c0_57, %c0_58, %c28], %16 {strides = array<i32>} : memref<1x16x16x36xbf16, #tpu.memory_space<vmem>>, vector<1x15x16x4xbf16>,
    %c0_59 = arith.constant 0 : index
    %c1_60 = arith.constant 1 : index
    %c1_61 = arith.constant 1 : index
    %c0_62 = arith.constant 0 : index
    %18 = vector.load %arg1[%c0_59, %c1_60, %c1_61, %c0_62] : memref<1x16x16x4xbf16, #tpu.memory_space<vmem>>, vector<1x15x15x4xbf16>
    %c0_63 = arith.constant 0 : index
    %c0_64 = arith.constant 0 : index
    %c0_65 = arith.constant 0 : index
    %c32 = arith.constant 32 : index
    %19 = vector.load %arg6[%c0_63, %c0_64, %c0_65, %c32] : memref<1x16x16x36xbf16, #tpu.memory_space<vmem>>, vector<1x15x15x4xbf16>
    tpu.vector_store %arg6[%c0_63, %c0_64, %c0_65, %c32], %18 {strides = array<i32>} : memref<1x16x16x36xbf16, #tpu.memory_space<vmem>>, vector<1x15x15x4xbf16>,
    %c0_66 = arith.constant 0 : index
    %c0_67 = arith.constant 0 : index
    %c0_68 = arith.constant 0 : index
    %c0_69 = arith.constant 0 : index
    %20 = vector.load %arg6[%c0_66, %c0_67, %c0_68, %c0_69] : memref<1x16x16x36xbf16, #tpu.memory_space<vmem>>, vector<1x16x16x36xbf16>
    %21 = vector.shape_cast %20 : vector<1x16x16x36xbf16> to vector<256x36xbf16>
    %c0_70 = arith.constant 0 : index
    %c0_71 = arith.constant 0 : index
    %22 = vector.load %arg2[%c0_70, %c0_71] : memref<8x36xbf16, #tpu.memory_space<vmem>>, vector<8x36xbf16>
    %cst_72 = arith.constant dense<0.000000e+00> : vector<8x256xf32>
    %23 = tpu.matmul %22, %21, %cst_72 {dimension_numbers = #tpu.dot_dimension_numbers<[1], [1], [0], [0], [0, 0, 1, 0], [], []>} : vector<8x36xbf16>, vector<256x36xbf16>, vector<8x256xf32> -> vector<8x256xf32>
    %c0_73 = arith.constant 0 : index
    %c0_74 = arith.constant 0 : index
    %24 = vector.load %arg3[%c0_73, %c0_74] : memref<8x1xf32, #tpu.memory_space<vmem>>, vector<8x1xf32>
    %25 = vector.broadcast %24 : vector<8x1xf32> to vector<8x256xf32>
    %26 = arith.addf %23, %25 : vector<8x256xf32>
    %c0_75 = arith.constant 0 : index
    %c0_76 = arith.constant 0 : index
    %27 = vector.load %arg4[%c0_75, %c0_76] : memref<8x1xf32, #tpu.memory_space<vmem>>, vector<8x1xf32>
    %cst_77 = arith.constant 0.000000e+00 : f32
    %28 = vector.broadcast %cst_77 : f32 to vector<8x256xf32>
    %29 = arith.cmpf ogt, %26, %28 : vector<8x256xf32>
    %30 = vector.broadcast %27 : vector<8x1xf32> to vector<8x256xf32>
    %31 = arith.mulf %30, %26 : vector<8x256xf32>
    %32 = arith.select %29, %26, %31 : vector<8x256xi1>, vector<8x256xf32>
    %33 = arith.truncf %32 : vector<8x256xf32> to vector<8x256xbf16>
    %c0_78 = arith.constant 0 : index
    %c0_79 = arith.constant 0 : index
    %c0_80 = arith.constant 0 : index
    %34 = vector.load %arg5[%c0_78, %c0_79, %c0_80] : memref<1x8x256xbf16, #tpu.memory_space<vmem>>, vector<1x8x256xbf16>
    %35 = vector.shape_cast %34 : vector<1x8x256xbf16> to vector<8x256xbf16>
    %36 = vector.shape_cast %33 : vector<8x256xbf16> to vector<1x8x256xbf16>
    tpu.vector_store %arg5[%c0_78, %c0_79, %c0_80], %36 {strides = array<i32>} : memref<1x8x256xbf16, #tpu.memory_space<vmem>>, vector<1x8x256xbf16>,
    return
  }
  func.func @transform_0(%arg0: i32) -> (i32, i32, i32, i32) {
    %c0_i32 = arith.constant 0 : i32
    %c0_i32_0 = arith.constant 0 : i32
    %c0_i32_1 = arith.constant 0 : i32
    %c0_i32_2 = arith.constant 0 : i32
    return %arg0, %c0_i32, %c0_i32_0, %c0_i32_1 : i32, i32, i32, i32
  }
  func.func @transform_1(%arg0: i32) -> (i32, i32) {
    %c0_i32 = arith.constant 0 : i32
    %c0_i32_0 = arith.constant 0 : i32
    %c0_i32_1 = arith.constant 0 : i32
    return %c0_i32, %c0_i32_0 : i32, i32
  }
  func.func @transform_2(%arg0: i32) -> (i32, i32) {
    %c0_i32 = arith.constant 0 : i32
    %c0_i32_0 = arith.constant 0 : i32
    %c0_i32_1 = arith.constant 0 : i32
    return %c0_i32, %c0_i32_0 : i32, i32
  }
  func.func @transform_3(%arg0: i32) -> (i32, i32) {
    %c0_i32 = arith.constant 0 : i32
    %c0_i32_0 = arith.constant 0 : i32
    %c0_i32_1 = arith.constant 0 : i32
    return %c0_i32, %c0_i32_0 : i32, i32
  }
  func.func @transform_4(%arg0: i32) -> (i32, i32, i32) {
    %c0_i32 = arith.constant 0 : i32
    %c0_i32_0 = arith.constant 0 : i32
    %c0_i32_1 = arith.constant 0 : i32
    return %arg0, %c0_i32, %c0_i32_0 : i32, i32, i32
  }
}

</mosaic_0001>

<bundles_post_ra>
// kernel: conv_block_forward.1
= control target key start
LH: loop header
LB: loop body
LE: loop exit
PB: predicated region body
PF: predicated region fallthrough
CT: control target
= control target key end

     0   :  { %s3211_s15 = smov 0   ;;  %s3886_s0 = inlined_call_operand.vmem [shape: bf16[2,16,16,4], index: 0, kind: input, shape index: {}]   ;;  %s3887_s1 = inlined_call_operand.vmem [shape: bf16[8,36], index: 1, kind: input, shape index: {}]   ;;  %s3888_s2 = inlined_call_operand.vmem [shape: f32[8,1], index: 2, kind: input, shape index: {}]   ;;  %s3889_s3 = inlined_call_operand.vmem [shape: f32[8,1], index: 3, kind: input, shape index: {}]   ;;  %s3890_s4 = inlined_call_operand.vmem [shape: bf16[2,8,256], index: 4, kind: output, shape index: {}]  }
   0x1 LB: > { %s2742_s16 = sadd.s32 4294967295, %s3175_s15   ;;  %p2746_p0 = scmp.ge.s32.totalorder %s3175_s15, 1  ;;  %s3175_s15 = sphi %s3211_s15, %s14_s15  }
   0x2   : > { %p162_p1 = scmp.lt.s32.totalorder %s3175_s15, 3 }
   0x4   : > { %p163_p2 = pnand %p2746_p0, %p162_p1 }
   0x5   : > { %p3219_p3 = scmp.lt.s32.totalorder (!%p163_p2), %s2742_s16, 1  ;;  %vm199_vm0 = vcmask (!%p163_p2), 293888   ;;  %v3177_v0 = vmov (!%p163_p2), 0   ;;  %s3178_s22 = smov (!%p163_p2), 4   ;;  %vm442_vm1 = vcmask (!%p163_p2), 31744   ;;  %vm640_vm4 = vcmask (!%p163_p2), 64544  }
   0x6   : > { %166 = sbr.rel (%p163_p2) target bundleno = 610 (0x262), region = 36  ;;  %209 = vst.msk [vmem:[#allocation2 + $0x48] sm:$0xff] (!%p163_p2), %vm199_vm0, %v3177_v0  ;;  %200 = vst.msk [vmem:[#allocation2] sm:$0xff] (!%p163_p2), %vm199_vm0, %v3177_v0  ;;  %3029 = vset.pattern.permute.xlu1 (!%p163_p2), %v3177_v0  ;;  %3030 = vset.pattern.permute.xlu0 (!%p163_p2), %v3177_v0  ;;  %s3179_s23 = smov (!%p163_p2), 8   ;;  %vm443_vm2 = vsmask.f32 (!%p163_p2), 7938 }
   0x7   : > { %201 = vst.msk [vmem:[#allocation2 + $0x8] sm:$0xff] (!%p163_p2), %vm199_vm0, %v3177_v0  ;;  %202 = vst.msk [vmem:[#allocation2 + $0x10] sm:$0xff] (!%p163_p2), %vm199_vm0, %v3177_v0  ;;  %s3180_s24 = smov (!%p163_p2), 12   ;;  %s3181_s25 = smov (!%p163_p2), 16   ;;  %vm911_vm5 = vcmask (!%p163_p2), 97344   ;;  %vm1231_vm7 = vcmask (!%p163_p2), 130144  }
   0x8   : > { %203 = vst.msk [vmem:[#allocation2 + $0x18] sm:$0xff] (!%p163_p2), %vm199_vm0, %v3177_v0  ;;  %204 = vst.msk [vmem:[#allocation2 + $0x20] sm:$0xff] (!%p163_p2), %vm199_vm0, %v3177_v0  ;;  %s3182_s26 = smov (!%p163_p2), 20   ;;  %s3183_s27 = smov (!%p163_p2), 24   ;;  %vm912_vm6 = vsmask.f32 (!%p163_p2), 7424 }
   0x9   : > { %205 = vst.msk [vmem:[#allocation2 + $0x28] sm:$0xff] (!%p163_p2), %vm199_vm0, %v3177_v0  ;;  %206 = vst.msk [vmem:[#allocation2 + $0x30] sm:$0xff] (!%p163_p2), %vm199_vm0, %v3177_v0  ;;  %s3184_s28 = smov (!%p163_p2), 28   ;;  %s3185_s29 = smov (!%p163_p2), 32   ;;  %vm1441_vm10 = vcmask (!%p163_p2), 162944   ;;  %vm1730_vm11 = vcmask (!%p163_p2), 195744  }
   0xa   : > { %207 = vst.msk [vmem:[#allocation2 + $0x38] sm:$0xff] (!%p163_p2), %vm199_vm0, %v3177_v0  ;;  %208 = vst.msk [vmem:[#allocation2 + $0x40] sm:$0xff] (!%p163_p2), %vm199_vm0, %v3177_v0  ;;  %vm2036_vm12 = vcmask (!%p163_p2), 228544   ;;  %vm2233_vm15 = vcmask (!%p163_p2), 261344  }
   0xb   : > { %210 = vst.msk [vmem:[#allocation2 + $0x50] sm:$0xff] (!%p163_p2), %vm199_vm0, %v3177_v0  ;;  %211 = vst.msk [vmem:[#allocation2 + $0x58] sm:$0xff] (!%p163_p2), %vm199_vm0, %v3177_v0 }
   0xc   : > { %212 = vst.msk [vmem:[#allocation2 + $0x60] sm:$0xff] (!%p163_p2), %vm199_vm0, %v3177_v0  ;;  %213 = vst.msk [vmem:[#allocation2 + $0x68] sm:$0xff] (!%p163_p2), %vm199_vm0, %v3177_v0 }
   0xd   : > { %214 = vst.msk [vmem:[#allocation2 + $0x70] sm:$0xff] %vm199_vm0, %v3177_v0  ;;  %215 = vst.msk [vmem:[#allocation2 + $0x78] sm:$0xff] %vm199_vm0, %v3177_v0  ;;  %s3905_s16 = smov (!%p3219_p3, %s2742_s16), 1 }
   0xe   : > { %s2983_s18 = sshll.u32 %s3905_s16, 7  ;;  %vm3341_vm3 = vmand %vm442_vm1, %vm443_vm2  ;;  %vm2504_vm1 = vcmask 294144   ;;  %s2984_s10 = sshll.u32 %s3905_s16, 3 }
   0xf   : > { %s3247_s21 = scalar_lea.vmem %s3886_s0, %s2983_s18  ;;  %vm3439_vm8 = vmand %vm911_vm5, %vm912_vm6  ;;  %s197_s13 = scalar_lea.vmem %s3890_s4, %s2984_s10 }
  0x10   : > { %v3031_v1 = vld [vmem:[%s3247_s21 + $0x40] sm:$0xff]   ;;  %v3032_v2 = vld [vmem:[%s3247_s21 + $0x38] sm:$0xff]   ;;  %v3033_v3 = vld [vmem:[%s3247_s21 + $0x48] sm:$0xff]  }
  0x11   : > { %611 = vrot.lane.b32.xlu1 %v3031_v1, %s3178_s22  ;;  %609 = vrot.lane.b32.xlu0 %v3032_v2, %s3178_s22  ;;  %v3034_v4 = vld [vmem:[%s3247_s21] sm:$0xff]   ;;  %v3035_v5 = vld [vmem:[%s3247_s21 + $0x38] sm:$0xff]   ;;  %vm3453_vm9 = vmand %vm1231_vm7, %vm443_vm2 }
  0x12   : > { %v3036_v6 = vld [vmem:[%s3247_s21 + $0x8] sm:$0xff]   ;;  %v811_v7 = vshrl.u32 %v3035_v5, 16  ;;  %v813_v8 = vshll.u32 %v3035_v5, 16  ;;  %v3037_v9 = vld [vmem:[%s3247_s21 + $0x40] sm:$0xff]   ;;  %v3043_v39 = vld [vmem:[%s3247_s21 + $0x50] sm:$0xff]  }
  0x13   : > { %v3038_v11 = vld [vmem:[%s3247_s21] sm:$0xff]   ;;  %v818_v12 = vshrl.u32 %v3037_v9, 16  ;;  %v820_v13 = vshll.u32 %v3037_v9, 16  ;;  %v3045_v31 = vld [vmem:[%s3247_s21 + $0x48] sm:$0xff]   ;;  %v3044_v40 = vld [vmem:[%s3247_s21 + $0x10] sm:$0xff]  }
  0x14   : > { %v815_v10 = vrot.slane %v813_v8, 1  ;;  %v3039_v14 = vld [vmem:[%s3247_s21 + $0x40] sm:$0xff]   ;;  %v762_v17 = vshrl.u32 %v3038_v11, 16  ;;  %v764_v18 = vshll.u32 %v3038_v11, 16  ;;  %v3046_v32 = vld [vmem:[%s3247_s21 + $0x8] sm:$0xff]   ;;  %v827_v35 = vshll.u32 %v3045_v31, 16  ;;  %vm3575_vm13 = vmand %vm1730_vm11, %vm912_vm6 }
  0x15   : > { %613 = vrot.lane.b32.xlu1 %v3033_v3, %s3178_s22  ;;  %595 = vrot.lane.b32.xlu0 %v3034_v4, %s3178_s22  ;;  %v3040_v15 = vld [vmem:[%s3247_s21] sm:$0xff]   ;;  %v822_v19 = vrot.slane %v820_v13, 1  ;;  %v1128_v20 = vshrl.u32 %v3039_v14, 16  ;;  %v1131_v23 = vshll.u32 %v3039_v14, 16  ;;  %v771_v36 = vshll.u32 %v3046_v32, 16  ;;  %v3047_v37 = vld [vmem:[%s3247_s21 + $0x48] sm:$0xff]   ;;  %vm3582_vm14 = vmand %vm2036_vm12, %vm443_vm2 }
  0x16   : > { %v816_v16 = vor.u32 %v815_v10, %v811_v7  ;;  %v1072_v21 = vshrl.u32 %v3040_v15, 16  ;;  %v766_v22 = vrot.slane %v764_v18, 1  ;;  %v1075_v24 = vshll.u32 %v3040_v15, 16  ;;  %v3041_v33 = vld [vmem:[%s3247_s21 + $0x40] sm:$0xff]   ;;  %v3048_v38 = vld [vmem:[%s3247_s21 + $0x8] sm:$0xff]   ;;  %v3055_v62 = vld [vmem:[%s3247_s21 + $0x50] sm:$0xff]  }
  0x17   : > { %v823_v25 = vor.u32 %v822_v19, %v818_v12  ;;  %v1130_v26 = vrot.slane %v1128_v20, 7  ;;  %v3042_v34 = vld [vmem:[%s3247_s21] sm:$0xff]   ;;  %v825_v41 = vshrl.u32 %v3045_v31, 16  ;;  %v829_v42 = vrot.slane %v827_v35, 1  ;;  %v3049_v59 = vld [vmem:[%s3247_s21 + $0x48] sm:$0xff]   ;;  %v3056_v2 = vld [vmem:[%s3247_s21 + $0x10] sm:$0xff]  }
  0x18   : > { %v1074_v27 = vrot.slane %v1072_v21, 7  ;;  %v767_v28 = vor.u32 %v766_v22, %v762_v17  ;;  %v769_v43 = vshrl.u32 %v3046_v32, 16  ;;  %v773_v44 = vrot.slane %v771_v36, 1  ;;  %v3051_v49 = vld [vmem:[%s3247_s21 + $0x40] sm:$0xff]   ;;  %v3050_v60 = vld [vmem:[%s3247_s21 + $0x8] sm:$0xff]   ;;  %v3057_v4 = vld [vmem:[%s3247_s21 + $0x50] sm:$0xff]  }
  0x19   : > { %597 = vrot.lane.b32.xlu0 %v3036_v6, %s3178_s22  ;;  %880 = vrot.lane.b32.xlu1 %v816_v16, %s3179_s23  ;;  %v1133_v29 = vor.u32 %v1131_v23, %v1130_v26  ;;  %v1135_v45 = vshrl.u32 %v3047_v37, 16  ;;  %v1079_v46 = vshrl.u32 %v3048_v38, 16  ;;  %v1138_v47 = vshll.u32 %v3047_v37, 16  ;;  %v3052_v50 = vld [vmem:[%s3247_s21] sm:$0xff]   ;;  %v3058_v5 = vld [vmem:[%s3247_s21 + $0x10] sm:$0xff]   ;;  %vm3671_vm2 = vmand %vm2504_vm1, %vm912_vm6 }
  0x1a   : > { %v1077_v30 = vor.u32 %v1075_v24, %v1074_v27  ;;  %v1082_v48 = vshll.u32 %v3048_v38, 16  ;;  %v830_v51 = vor.u32 %v829_v42, %v825_v41  ;;  %v774_v52 = vor.u32 %v773_v44, %v769_v43  ;;  %v3053_v9 = vld [vmem:[%s3247_s21 + $0x58] sm:$0xff]   ;;  %v3061_v19 = vld [vmem:[%s3247_s21 + $0x48] sm:$0xff]   ;;  %v3059_v31 = vld [vmem:[%s3247_s21 + $0x50] sm:$0xff]  }
  0x1b   : > { %v1137_v53 = vrot.slane %v1135_v45, 7  ;;  %v1081_v54 = vrot.slane %v1079_v46, 7  ;;  %v1629_v57 = vshll.u32 %v3051_v49, 16  ;;  %v1573_v58 = vshll.u32 %v3052_v50, 16  ;;  %v3054_v10 = vld [vmem:[%s3247_s21 + $0x18] sm:$0xff]   ;;  %v3062_v24 = vld [vmem:[%s3247_s21 + $0x8] sm:$0xff]  }
  0x1c   : > { %v1627_v61 = vshrl.u32 %v3051_v49, 16  ;;  %v1571_v0 = vshrl.u32 %v3052_v50, 16  ;;  %v834_v3 = vshll.u32 %v3055_v62, 16  ;;  %v778_v8 = vshll.u32 %v3056_v2, 16  ;;  %v3063_v26 = vld [vmem:[%s3247_s21 + $0x48] sm:$0xff]   ;;  %v3060_v32 = vld [vmem:[%s3247_s21 + $0x10] sm:$0xff]  }
  0x1d   : > { %882 = vrot.lane.b32.xlu1 %v823_v25, %s3179_s23  ;;  %866 = vrot.lane.b32.xlu0 %v767_v28, %s3179_s23  ;;  %v1140_v55 = vor.u32 %v1138_v47, %v1137_v53  ;;  %v1084_v56 = vor.u32 %v1082_v48, %v1081_v54  ;;  %v1631_v63 = vrot.slane %v1629_v57, 1  ;;  %v1575_v1 = vrot.slane %v1573_v58, 1  ;;  %v3069_v45 = vld [vmem:[%s3247_s21 + $0x58] sm:$0xff]   ;;  %v3065_v50 = vld [vmem:[%s3247_s21 + $0x48] sm:$0xff]  }
  0x1e   : > { %v832_v11 = vshrl.u32 %v3055_v62, 16  ;;  %v836_v12 = vrot.slane %v834_v3, 1  ;;  %v776_v13 = vshrl.u32 %v3056_v2, 16  ;;  %v1142_v14 = vshrl.u32 %v3057_v4, 16  ;;  %v3070_v46 = vld [vmem:[%s3247_s21 + $0x18] sm:$0xff]   ;;  %v3068_v57 = vld [vmem:[%s3247_s21 + $0x20] sm:$0xff]  }
  0x1f   : > { %v1632_v6 = vor.u32 %v1631_v63, %v1627_v61  ;;  %v1576_v7 = vor.u32 %v1575_v1, %v1571_v0  ;;  %v780_v15 = vrot.slane %v778_v8, 1  ;;  %v1086_v16 = vshrl.u32 %v3058_v5, 16  ;;  %v3071_v49 = vld [vmem:[%s3247_s21 + $0x58] sm:$0xff]   ;;  %v3089_v61 = vld [vmem:[%s3247_s21 + $0x40] sm:$0xff]  }
  0x20   : > { %v1145_v17 = vshll.u32 %v3057_v4, 16  ;;  %v1089_v18 = vshll.u32 %v3058_v5, 16  ;;  %v837_v20 = vor.u32 %v836_v12, %v832_v11  ;;  %v1144_v22 = vrot.slane %v1142_v14, 7  ;;  %v3072_v54 = vld [vmem:[%s3247_s21 + $0x18] sm:$0xff]   ;;  %v3330_v5 = vld [vmem:[%s3247_s21 + $0x50] sm:$0xff]   ;;  %v3093_v14 = vld [vmem:[%s3247_s21 + $0x48] sm:$0xff]  }
  0x21   : > { %1199 = vrot.lane.b32.xlu1 %v1133_v29, %s3180_s24  ;;  %1183 = vrot.lane.b32.xlu0 %v1077_v30, %s3180_s24  ;;  %v781_v21 = vor.u32 %v780_v15, %v776_v13  ;;  %v1088_v23 = vrot.slane %v1086_v16, 7  ;;  %v1636_v25 = vshll.u32 %v3061_v19, 16  ;;  %v1580_v29 = vshll.u32 %v3062_v24, 16  ;;  %v3064_v30 = vld [vmem:[%s3247_s21 + $0x8] sm:$0xff]   ;;  %v3090_v3 = vld [vmem:[%s3247_s21 + $0x38] sm:$0xff]   ;;  %v466_v13 = vld [vmem:[#allocation2 + $0x40] sm:$0xff] }
  0x22   : > { %v1147_v27 = vor.u32 %v1145_v17, %v1144_v22  ;;  %v1578_v35 = vshrl.u32 %v3062_v24, 16  ;;  %v1943_v37 = vshrl.u32 %v3063_v26, 16  ;;  %v1887_v38 = vshrl.u32 %v3064_v30, 16 }
  0x23   : > { %v1091_v28 = vor.u32 %v1089_v18, %v1088_v23  ;;  %v1582_v36 = vrot.slane %v1580_v29, 1  ;;  %v1890_v44 = vshll.u32 %v3064_v30, 16  ;;  %v785_v53 = vshll.u32 %v3070_v46, 16  ;;  %v3094_v23 = vld [vmem:[%s3247_s21] sm:$0xff]  }
  0x24   : > { %v1945_v42 = vrot.slane %v1943_v37, 7  ;;  %v1889_v43 = vrot.slane %v1887_v38, 7  ;;  %v839_v58 = vshrl.u32 %v3069_v45, 16  ;;  %v1152_v63 = vshll.u32 %v3071_v49, 16  ;;  %v445_v38 = vld [vmem:[#allocation2 + $0x8] sm:$0xff] }
  0x25   : > { %1409 = vrot.lane.b32.xlu1 %v3041_v33, %s3181_s25  ;;  %1393 = vrot.lane.b32.xlu0 %v3042_v34, %s3181_s25  ;;  %v1634_v33 = vshrl.u32 %v3061_v19, 16  ;;  %v1638_v34 = vrot.slane %v1636_v25, 1  ;;  %v1583_v41 = vor.u32 %v1582_v36, %v1578_v35  ;;  %v787_v62 = vrot.slane %v785_v53, 1  ;;  %v472_v36 = vld [vmem:[#allocation2 + $0x50] sm:$0xff] }
  0x26   : > { %v1892_v48 = vor.u32 %v1890_v44, %v1889_v43  ;;  %v1093_v0 = vshrl.u32 %v3072_v54, 16  ;;  %v378_v1 = vshrl.u32 %v3089_v61, 16  ;;  %v381_v2 = vshll.u32 %v3089_v61, 16 }
  0x27   : > { %v1096_v12 = vshll.u32 %v3072_v54, 16  ;;  %v1643_v19 = vshll.u32 %v3330_v5, 16  ;;  %v388_v22 = vshll.u32 %v3093_v14, 16  ;;  %v322_v29 = vshrl.u32 %v3094_v23, 16  ;;  %v448_v54 = vld [vmem:[#allocation2 + $0x10] sm:$0xff] }
  0x28   : > { %v380_v8 = vrot.slane %v378_v1, 7  ;;  %v1095_v16 = vrot.slane %v1093_v0, 7  ;;  %v325_v30 = vshll.u32 %v3094_v23, 16 }
  0x29   : > { %615 = vrot.lane.b32.xlu1 %v3043_v39, %s3178_s22  ;;  %599 = vrot.lane.b32.xlu0 %v3044_v40, %s3178_s22  ;;  %v1639_v39 = vor.u32 %v1638_v34, %v1634_v33  ;;  %v1946_v40 = vshll.u32 %v3063_v26, 16  ;;  %v3077_v26 = vld [vmem:[%s3247_s21 + $0x50] sm:$0xff]  }
  0x2a   : > { %v383_v17 = vor.u32 %v381_v2, %v380_v8  ;;  %v1098_v33 = vor.u32 %v1096_v12, %v1095_v16  ;;  %v3106_v2 = vld [vmem:[%s3247_s21 + $0x50] sm:$0xff]   ;;  %v3085_v16 = vld [vmem:[%s3247_s21 + $0x60] sm:$0xff]  }
  0x2b   : > { %v1948_v47 = vor.u32 %v1946_v40, %v1945_v42  ;;  %v3073_v40 = vld [vmem:[%s3247_s21 + $0x58] sm:$0xff]   ;;  %v1641_v42 = vshrl.u32 %v3330_v5, 16  ;;  %v395_v8 = vshll.u32 %v3106_v2, 16 }
  0x2d   : > { %884 = vrot.lane.b32.xlu1 %v830_v51, %s3179_s23  ;;  %868 = vrot.lane.b32.xlu0 %v774_v52, %s3179_s23  ;;  %v841_v51 = vshll.u32 %v3069_v45, 16  ;;  %v3066_v52 = vld [vmem:[%s3247_s21 + $0x8] sm:$0xff]   ;;  %v1645_v45 = vrot.slane %v1643_v19, 1 }
  0x31   : > { %1201 = vrot.lane.b32.xlu1 %v1140_v55, %s3180_s24  ;;  %1185 = vrot.lane.b32.xlu0 %v1084_v56, %s3180_s24  ;;  %v1149_v55 = vshrl.u32 %v3071_v49, 16  ;;  %v3067_v56 = vld [vmem:[%s3247_s21 + $0x60] sm:$0xff]  }
  0x33   : > { %v1151_v4 = vrot.slane %v1149_v55, 7  ;;  %v3081_v55 = vld [vmem:[%s3247_s21 + $0x48] sm:$0xff]  }
  0x34   : > { %v2413_v1 = vshll.u32 %v3081_v55, 16 }
  0x35   : > { %1411 = vrot.lane.b32.xlu1 %v3049_v59, %s3181_s25  ;;  %1395 = vrot.lane.b32.xlu0 %v3050_v60, %s3181_s25  ;;  %v843_v59 = vrot.slane %v841_v51, 1  ;;  %v783_v60 = vshrl.u32 %v3070_v46, 16 }
  0x36   : > { %v2415_v12 = vrot.slane %v2413_v1, 1 }
  0x37   : > { %v844_v11 = vor.u32 %v843_v59, %v839_v58  ;;  %v788_v15 = vor.u32 %v787_v62, %v783_v60  ;;  %v1953_v58 = vshll.u32 %v3077_v26, 16 }
  0x39   : > { %1698 = vrot.lane.b32.xlu1 %v1632_v6, %s3182_s26  ;;  %1682 = vrot.lane.b32.xlu0 %v1576_v7, %s3182_s26  ;;  %v469_v6 = vld [vmem:[#allocation2 + $0x48] sm:$0xff]  ;;  %v3333_v7 = vld [vmem:[%s3247_s21 + $0x10] sm:$0xff]  }
  0x3a   : > { %v470_v24 = vsel %vm3341_vm3, %v383_v17, %v469_v6  ;;  %v1587_v34 = vshll.u32 %v3333_v7, 16  ;;  %v1585_v46 = vshrl.u32 %v3333_v7, 16  ;;  %v3107_v6 = vld [vmem:[%s3247_s21 + $0x10] sm:$0xff]   ;;  %v392_v7 = vshrl.u32 %v3106_v2, 16  ;;  %v454_v2 = vld [vmem:[#allocation2 + $0x20] sm:$0xff] }
  0x3b   : > { %471 = vst [vmem:[#allocation2 + $0x48] sm:$0xff] %v470_v24  ;;  %v451_v24 = vld [vmem:[#allocation2 + $0x18] sm:$0xff] }
  0x3c   : > { %v1589_v49 = vrot.slane %v1587_v34, 1  ;;  %v394_v17 = vrot.slane %v392_v7, 7  ;;  %v3083_v34 = vld [vmem:[%s3247_s21 + $0x68] sm:$0xff]  }
  0x3d   : > { %617 = vrot.lane.b32.xlu1 %v3053_v9, %s3178_s22  ;;  %601 = vrot.lane.b32.xlu0 %v3054_v10, %s3178_s22  ;;  %v371_v9 = vshrl.u32 %v3090_v3, 16  ;;  %v374_v10 = vshll.u32 %v3090_v3, 16 }
  0x3e   : > { %v1590_v60 = vor.u32 %v1589_v49, %v1585_v46  ;;  %v397_v23 = vor.u32 %v395_v8, %v394_v17  ;;  %v3118_v46 = vld [vmem:[%s3247_s21 + $0x58] sm:$0xff]   ;;  %v3102_v17 = vld [vmem:[%s3247_s21 + $0x50] sm:$0xff]  }
  0x3f   : > { %v373_v18 = vrot.slane %v371_v9, 7  ;;  %v3079_v9 = vld [vmem:[%s3247_s21 + $0x50] sm:$0xff]  }
  0x41   : > { %886 = vrot.lane.b32.xlu1 %v837_v20, %s3179_s23  ;;  %870 = vrot.lane.b32.xlu0 %v781_v21, %s3179_s23  ;;  %v385_v21 = vshrl.u32 %v3093_v14, 16  ;;  %v376_v25 = vor.u32 %v374_v10, %v373_v18  ;;  %v3080_v10 = vld [vmem:[%s3247_s21 + $0x10] sm:$0xff]   ;;  %v336_v14 = vshrl.u32 %v3107_v6, 16 }
  0x43   : > { %v467_v35 = vsel %vm3341_vm3, %v376_v25, %v466_v13  ;;  %v475_v13 = vld [vmem:[#allocation2 + $0x58] sm:$0xff]  ;;  %v3087_v25 = vld [vmem:[%s3247_s21 + $0x60] sm:$0xff]  }
  0x44   : > { %468 = vst [vmem:[#allocation2 + $0x40] sm:$0xff] %v467_v35  ;;  %v1156_v35 = vshrl.u32 %v3087_v25, 16 }
  0x45   : > { %1203 = vrot.lane.b32.xlu1 %v1147_v27, %s3180_s24  ;;  %1187 = vrot.lane.b32.xlu0 %v1091_v28, %s3180_s24  ;;  %v3078_v27 = vld [vmem:[%s3247_s21 + $0x10] sm:$0xff]   ;;  %v387_v28 = vrot.slane %v385_v21, 7  ;;  %v3086_v21 = vld [vmem:[%s3247_s21 + $0x20] sm:$0xff]  }
  0x46   : > { %v1894_v51 = vshrl.u32 %v3078_v27, 16  ;;  %v1897_v59 = vshll.u32 %v3078_v27, 16 }
  0x47   : > { %v390_v37 = vor.u32 %v388_v22, %v387_v28  ;;  %v338_v22 = vrot.slane %v336_v14, 7  ;;  %v3088_v28 = vld [vmem:[%s3247_s21 + $0x20] sm:$0xff]  }
  0x48   : > { %v1896_v62 = vrot.slane %v1894_v51, 7  ;;  %v399_v51 = vshrl.u32 %v3118_v46, 16 }
  0x49   : > { %1413 = vrot.lane.b32.xlu1 %v3059_v31, %s3181_s25  ;;  %1397 = vrot.lane.b32.xlu0 %v3060_v32, %s3181_s25  ;;  %v3097_v31 = vld [vmem:[%s3247_s21 + $0x8] sm:$0xff]   ;;  %v1154_v32 = vor.u32 %v1152_v63, %v1151_v4 }
  0x4a   : > { %v329_v43 = vshrl.u32 %v3097_v31, 16  ;;  %v332_v44 = vshll.u32 %v3097_v31, 16  ;;  %v3082_v63 = vld [vmem:[%s3247_s21 + $0x8] sm:$0xff]   ;;  %v1899_v4 = vor.u32 %v1897_v59, %v1896_v62  ;;  %v848_v31 = vshll.u32 %v3085_v16, 16 }
  0x4b   : > { %v2357_v5 = vshll.u32 %v3082_v63, 16  ;;  %v2355_v18 = vshrl.u32 %v3082_v63, 16  ;;  %v3099_v63 = vld [vmem:[%s3247_s21 + $0x18] sm:$0xff]  }
  0x4d   : > { %1700 = vrot.lane.b32.xlu1 %v1639_v39, %s3182_s26  ;;  %1684 = vrot.lane.b32.xlu0 %v1583_v41, %s3182_s26  ;;  %v324_v39 = vrot.slane %v322_v29, 7  ;;  %v3074_v41 = vld [vmem:[%s3247_s21 + $0x18] sm:$0xff]   ;;  %v2359_v19 = vrot.slane %v2357_v5, 1  ;;  %v476_v29 = vsel %vm3341_vm3, %v397_v23, %v475_v13  ;;  %v1901_v13 = vshrl.u32 %v3099_v63, 16 }
  0x4e   : > { %477 = vst [vmem:[#allocation2 + $0x58] sm:$0xff] %v476_v29 }
  0x51   : > { %2007 = vrot.lane.b32.xlu1 %v1948_v47, %s3183_s27  ;;  %1991 = vrot.lane.b32.xlu0 %v1892_v48, %s3183_s27  ;;  %v473_v47 = vsel %vm3341_vm3, %v390_v37, %v472_v36  ;;  %v327_v48 = vor.u32 %v325_v30, %v324_v39  ;;  %v2360_v30 = vor.u32 %v2359_v19, %v2355_v18  ;;  %v3084_v36 = vld [vmem:[%s3247_s21 + $0x28] sm:$0xff]   ;;  %v846_v37 = vshrl.u32 %v3085_v16, 16  ;;  %v3103_v19 = vld [vmem:[%s3247_s21 + $0x10] sm:$0xff]  }
  0x52   : > { %474 = vst [vmem:[#allocation2 + $0x50] sm:$0xff] %v473_v47  ;;  %v1100_v39 = vshrl.u32 %v3088_v28, 16 }
  0x53   : > { %v446_v53 = vsel %vm3341_vm3, %v327_v48, %v445_v38  ;;  %v790_v38 = vshrl.u32 %v3086_v21, 16  ;;  %v3096_v48 = vld [vmem:[%s3247_s21 + $0x18] sm:$0xff]  }
  0x54   : > { %447 = vst [vmem:[#allocation2 + $0x8] sm:$0xff] %v446_v53  ;;  %v1102_v47 = vrot.slane %v1100_v39, 7  ;;  %v3119_v53 = vld [vmem:[%s3247_s21 + $0x18] sm:$0xff]   ;;  %v1594_v62 = vshll.u32 %v3096_v48, 16  ;;  %v1592_v7 = vshrl.u32 %v3096_v48, 16  ;;  %v3430_v39 = vld [vmem:[%s3247_s21 + $0x28] sm:$0xff]  }
  0x55   : > { %2204 = vrot.lane.b32.xlu1 %v3065_v50, %s3184_s28  ;;  %2188 = vrot.lane.b32.xlu0 %v3066_v52, %s3184_s28  ;;  %v1950_v50 = vshrl.u32 %v3077_v26, 16  ;;  %v331_v52 = vrot.slane %v329_v43, 7  ;;  %v1103_v43 = vshll.u32 %v3088_v28, 16  ;;  %v2420_v28 = vshll.u32 %v3102_v17, 16 }
  0x57   : > { %v1952_v61 = vrot.slane %v1950_v50, 7  ;;  %v1105_v59 = vor.u32 %v1103_v43, %v1102_v47  ;;  %v481_v47 = vld [vmem:[#allocation2 + $0x68] sm:$0xff] }
  0x59   : > { %619 = vrot.lane.b32.xlu1 %v3067_v56, %s3178_s22  ;;  %603 = vrot.lane.b32.xlu0 %v3068_v57, %s3178_s22  ;;  %v334_v56 = vor.u32 %v332_v44, %v331_v52  ;;  %v1646_v57 = vor.u32 %v1645_v45, %v1641_v42  ;;  %v1955_v3 = vor.u32 %v1953_v58, %v1952_v61  ;;  %v1159_v42 = vshll.u32 %v3087_v25, 16  ;;  %v3095_v45 = vld [vmem:[%s3247_s21 + $0x58] sm:$0xff]  }
  0x5a   : > { %v1158_v44 = vrot.slane %v1156_v35, 7  ;;  %v402_v52 = vshll.u32 %v3118_v46, 16  ;;  %v1650_v61 = vshll.u32 %v3095_v45, 16  ;;  %v1904_v25 = vshll.u32 %v3099_v63, 16 }
  0x5b   : > { %v449_v0 = vsel %vm3341_vm3, %v334_v56, %v448_v54  ;;  %v478_v54 = vld [vmem:[#allocation2 + $0x60] sm:$0xff]  ;;  %v343_v56 = vshrl.u32 %v3119_v53, 16 }
  0x5c   : > { %450 = vst [vmem:[#allocation2 + $0x10] sm:$0xff] %v449_v0  ;;  %v1161_v58 = vor.u32 %v1159_v42, %v1158_v44  ;;  %v3135_v42 = vld [vmem:[%s3247_s21 + $0x20] sm:$0xff]   ;;  %v3109_v44 = vld [vmem:[%s3247_s21 + $0x68] sm:$0xff]  }
  0x5d   : > { %888 = vrot.lane.b32.xlu1 %v844_v11, %s3179_s23  ;;  %872 = vrot.lane.b32.xlu0 %v788_v15, %s3179_s23  ;;  %v2411_v11 = vshrl.u32 %v3081_v55, 16  ;;  %v339_v15 = vshll.u32 %v3107_v6, 16  ;;  %v401_v55 = vrot.slane %v399_v51, 7  ;;  %v345_v1 = vrot.slane %v343_v56, 7  ;;  %v3111_v56 = vld [vmem:[%s3247_s21 + $0x68] sm:$0xff]  }
  0x5e   : > { %v350_v48 = vshrl.u32 %v3135_v42, 16 }
  0x5f   : > { %v341_v26 = vor.u32 %v339_v15, %v338_v22  ;;  %v2416_v27 = vor.u32 %v2415_v12, %v2411_v11  ;;  %v404_v0 = vor.u32 %v402_v52, %v401_v55  ;;  %v1652_v11 = vrot.slane %v1650_v61, 1 }
  0x60   : > { %v1596_v12 = vrot.slane %v1594_v62, 1  ;;  %v352_v61 = vrot.slane %v350_v48, 7 }
  0x61   : > { %1205 = vrot.lane.b32.xlu1 %v1154_v32, %s3180_s24  ;;  %1189 = vrot.lane.b32.xlu0 %v1098_v33, %s3180_s24  ;;  %v792_v32 = vshll.u32 %v3086_v21, 16  ;;  %v452_v33 = vsel %vm3341_vm3, %v341_v26, %v451_v24  ;;  %v479_v5 = vsel %vm3341_vm3, %v404_v0, %v478_v54  ;;  %v1903_v24 = vrot.slane %v1901_v13, 7 }
  0x62   : > { %453 = vst [vmem:[#allocation2 + $0x18] sm:$0xff] %v452_v33  ;;  %480 = vst [vmem:[#allocation2 + $0x60] sm:$0xff] %v479_v5  ;;  %v1597_v23 = vor.u32 %v1596_v12, %v1592_v7  ;;  %v2418_v33 = vshrl.u32 %v3102_v17, 16  ;;  %v1107_v0 = vshrl.u32 %v3430_v39, 16  ;;  %v1110_v7 = vshll.u32 %v3430_v39, 16 }
  0x63   : > { %v853_v12 = vshrl.u32 %v3109_v44, 16  ;;  %v1163_v17 = vshrl.u32 %v3111_v56, 16 }
  0x65   : > { %1415 = vrot.lane.b32.xlu1 %v3073_v40, %s3181_s25  ;;  %1399 = vrot.lane.b32.xlu0 %v3074_v41, %s3181_s25  ;;  %v850_v40 = vrot.slane %v848_v31, 1  ;;  %v794_v41 = vrot.slane %v792_v32, 1  ;;  %v2364_v31 = vshll.u32 %v3103_v19, 16 }
  0x67   : > { %v851_v49 = vor.u32 %v850_v40, %v846_v37  ;;  %v795_v50 = vor.u32 %v794_v41, %v790_v38  ;;  %v3101_v37 = vld [vmem:[%s3247_s21 + $0x18] sm:$0xff]   ;;  %v3134_v40 = vld [vmem:[%s3247_s21 + $0x60] sm:$0xff]   ;;  %v2422_v41 = vrot.slane %v2420_v28, 1  ;;  %v2366_v43 = vrot.slane %v2364_v31, 1 }
  0x68   : > { %v409_v46 = vshll.u32 %v3134_v40, 16 }
  0x69   : > { %1702 = vrot.lane.b32.xlu1 %v1646_v57, %s3182_s26  ;;  %1686 = vrot.lane.b32.xlu0 %v1590_v60, %s3182_s26  ;;  %v346_v57 = vshll.u32 %v3119_v53, 16  ;;  %v3098_v60 = vld [vmem:[%s3247_s21 + $0x58] sm:$0xff]   ;;  %v1233_v53 = vld [vmem:[#allocation2] sm:$0xff] }
  0x6a   : > { %v1957_v8 = vshrl.u32 %v3098_v60, 16  ;;  %v1960_v16 = vshll.u32 %v3098_v60, 16  ;;  %v2423_v60 = vor.u32 %v2422_v41, %v2418_v33 }
  0x6b   : > { %v348_v6 = vor.u32 %v346_v57, %v345_v1  ;;  %v855_v1 = vshll.u32 %v3109_v44, 16 }
  0x6c   : > { %v1959_v18 = vrot.slane %v1957_v8, 7 }
  0x6d   : > { %2009 = vrot.lane.b32.xlu1 %v1955_v3, %s3183_s27  ;;  %1993 = vrot.lane.b32.xlu0 %v1899_v4, %s3183_s27  ;;  %v3091_v3 = vld [vmem:[%s3247_s21 + $0x60] sm:$0xff]   ;;  %v1648_v4 = vshrl.u32 %v3095_v45, 16  ;;  %v455_v14 = vsel %vm3341_vm3, %v348_v6, %v454_v2  ;;  %v406_v45 = vshrl.u32 %v3134_v40, 16 }
  0x6e   : > { %456 = vst [vmem:[#allocation2 + $0x20] sm:$0xff] %v455_v14  ;;  %v1962_v29 = vor.u32 %v1960_v16, %v1959_v18  ;;  %v857_v16 = vrot.slane %v855_v1, 1  ;;  %v3112_v18 = vld [vmem:[%s3247_s21 + $0x20] sm:$0xff]   ;;  %v3153_v1 = vld [vmem:[%s3247_s21 + $0x28] sm:$0xff]  }
  0x6f   : > { %v1653_v22 = vor.u32 %v1652_v11, %v1648_v4  ;;  %v408_v57 = vrot.slane %v406_v45, 7  ;;  %v3105_v11 = vld [vmem:[%s3247_s21 + $0x30] sm:$0xff]   ;;  %v1601_v28 = vshll.u32 %v3112_v18, 16  ;;  %v1599_v33 = vshrl.u32 %v3112_v18, 16 }
  0x71   : > { %2206 = vrot.lane.b32.xlu1 %v3079_v9, %s3184_s28  ;;  %2190 = vrot.lane.b32.xlu0 %v3080_v10, %s3184_s28  ;;  %v3092_v10 = vld [vmem:[%s3247_s21 + $0x20] sm:$0xff]   ;;  %v411_v2 = vor.u32 %v409_v46, %v408_v57 }
  0x73   : > { %v482_v8 = vsel %vm3341_vm3, %v411_v2, %v481_v47  ;;  %v3113_v47 = vld [vmem:[%s3247_s21 + $0x68] sm:$0xff]  }
  0x74   : > { %483 = vst [vmem:[#allocation2 + $0x68] sm:$0xff] %v482_v8  ;;  %v360_v8 = vshll.u32 %v3153_v1, 16 }
  0x75   : > { %2475 = vrot.lane.b32.xlu1 %v2416_v27, %s3185_s29  ;;  %2459 = vrot.lane.b32.xlu0 %v2360_v30, %s3185_s29  ;;  %v3421_v27 = vld [vmem:[%s3247_s21 + $0x28] sm:$0xff]   ;;  %v1906_v30 = vor.u32 %v1904_v25, %v1903_v24  ;;  %v3115_v24 = vld [vmem:[%s3247_s21 + $0x60] sm:$0xff]  }
  0x76   : > { %v799_v38 = vshll.u32 %v3421_v27, 16  ;;  %v797_v54 = vshrl.u32 %v3421_v27, 16  ;;  %v1165_v27 = vrot.slane %v1163_v17, 7  ;;  %v1655_v48 = vshrl.u32 %v3115_v24, 16 }
  0x78   : > { %v801_v55 = vrot.slane %v799_v38, 1 }
  0x79   : > { %621 = vrot.lane.b32.xlu1 %v3083_v34, %s3178_s22  ;;  %605 = vrot.lane.b32.xlu0 %v3084_v36, %s3178_s22  ;;  %v2362_v34 = vshrl.u32 %v3103_v19, 16  ;;  %v3100_v36 = vld [vmem:[%s3247_s21 + $0x58] sm:$0xff]  }
  0x7a   : > { %v802_v14 = vor.u32 %v801_v55, %v797_v54 }
  0x7b   : > { %v2367_v63 = vor.u32 %v2366_v43, %v2362_v34  ;;  %v3117_v34 = vld [vmem:[%s3247_s21 + $0x60] sm:$0xff]   ;;  %v3120_v43 = vld [vmem:[%s3247_s21 + $0x18] sm:$0xff]  }
  0x7c   : > { %v1964_v45 = vshrl.u32 %v3117_v34, 16  ;;  %v1967_v57 = vshll.u32 %v3117_v34, 16  ;;  %v2369_v2 = vshrl.u32 %v3120_v43, 16 }
  0x7d   : > { %890 = vrot.lane.b32.xlu1 %v851_v49, %s3179_s23  ;;  %874 = vrot.lane.b32.xlu0 %v795_v50, %s3179_s23  ;;  %v353_v49 = vshll.u32 %v3135_v42, 16 }
  0x81   : > { %1207 = vrot.lane.b32.xlu1 %v1161_v58, %s3180_s24  ;;  %1191 = vrot.lane.b32.xlu0 %v1105_v59, %s3180_s24  ;;  %v457_v58 = vld [vmem:[#allocation2 + $0x28] sm:$0xff] }
  0x83   : > { %v612_v9 = vpop.permute.xlu1 %611  ;;  %v610_v15 = vpop.permute.xlu0 %609 }
  0x84   : > { %649 = vst.msk [vmem:[#allocation2 + $0x48] sm:$0xff] %vm640_vm4, %v612_v9  ;;  %648 = vst.msk [vmem:[#allocation2 + $0x40] sm:$0xff] %vm640_vm4, %v610_v15  ;;  %v1109_v15 = vrot.slane %v1107_v0, 7 }
  0x85   : > { %1417 = vrot.lane.b32.xlu1 %v3091_v3, %s3181_s25  ;;  %1401 = vrot.lane.b32.xlu0 %v3092_v10, %s3181_s25  ;;  %v355_v3 = vor.u32 %v353_v49, %v352_v61 }
  0x86   : > { %v1112_v25 = vor.u32 %v1110_v7, %v1109_v15  ;;  %v357_v7 = vshrl.u32 %v3153_v1, 16 }
  0x87   : > { %v614_v21 = vpop.permute.xlu1 %613  ;;  %v596_v26 = vpop.permute.xlu0 %595  ;;  %v458_v13 = vsel %vm3341_vm3, %v355_v3, %v457_v58  ;;  %v2371_v58 = vshll.u32 %v3120_v43, 16  ;;  %v3123_v3 = vld [vmem:[%s3247_s21 + $0x58] sm:$0xff]   ;;  %v3129_v43 = vld [vmem:[%s3247_s21 + $0x28] sm:$0xff]  }
  0x88   : > { %650 = vst.msk [vmem:[#allocation2 + $0x50] sm:$0xff] %vm640_vm4, %v614_v21  ;;  %641 = vst.msk [vmem:[#allocation2 + $0x8] sm:$0xff] %vm640_vm4, %v596_v26  ;;  %v858_v26 = vor.u32 %v857_v16, %v853_v12  ;;  %v359_v15 = vrot.slane %v357_v7, 7  ;;  %v2427_v18 = vshll.u32 %v3123_v3, 16 }
  0x89   : > { %1704 = vrot.lane.b32.xlu1 %v1653_v22, %s3182_s26  ;;  %1688 = vrot.lane.b32.xlu0 %v1597_v23, %s3182_s26  ;;  %459 = vst [vmem:[#allocation2 + $0x28] sm:$0xff] %v458_v13  ;;  %v3114_v22 = vld [vmem:[%s3247_s21 + $0x20] sm:$0xff]   ;;  %v1166_v23 = vshll.u32 %v3111_v56, 16  ;;  %v2373_v12 = vrot.slane %v2371_v58, 1  ;;  %v1608_v58 = vshll.u32 %v3129_v43, 16 }
  0x8a   : > { %v1908_v31 = vshrl.u32 %v3114_v22, 16  ;;  %v1911_v42 = vshll.u32 %v3114_v22, 16  ;;  %v460_v22 = vld [vmem:[#allocation2 + $0x30] sm:$0xff] }
  0x8b   : > { %v598_v32 = vpop.permute.xlu0 %597  ;;  %v881_v35 = vpop.permute.xlu1 %880  ;;  %v935_v59 = vld [vmem:[#allocation2 + $0x40] sm:$0xff]  ;;  %v938_v38 = vld [vmem:[#allocation2 + $0x48] sm:$0xff]  ;;  %v1610_v7 = vrot.slane %v1608_v58, 1 }
  0x8c   : > { %642 = vst.msk [vmem:[#allocation2 + $0x10] sm:$0xff] %vm640_vm4, %v598_v32  ;;  %v936_v4 = vsel %vm3439_vm8, %v881_v35, %v935_v59  ;;  %v3110_v32 = vld [vmem:[%s3247_s21 + $0x28] sm:$0xff]   ;;  %v1168_v35 = vor.u32 %v1166_v23, %v1165_v27  ;;  %v1910_v41 = vrot.slane %v1908_v31, 7  ;;  %v3500_v59 = vld [vmem:[%s3247_s21 + $0x30] sm:$0xff]   ;;  %v362_v23 = vor.u32 %v360_v8, %v359_v15 }
  0x8d   : > { %2011 = vrot.lane.b32.xlu1 %v1962_v29, %s3183_s27  ;;  %1995 = vrot.lane.b32.xlu0 %v1906_v30, %s3183_s27  ;;  %v806_v17 = vshll.u32 %v3500_v59, 16 }
  0x8e   : > { %v1913_v0 = vor.u32 %v1911_v42, %v1910_v41  ;;  %v461_v31 = vsel %vm3341_vm3, %v362_v23, %v460_v22  ;;  %v3128_v42 = vld [vmem:[%s3247_s21 + $0x68] sm:$0xff]  }
  0x8f   : > { %v3443_v51 = vpop.permute.xlu1 %882  ;;  %v3445_v52 = vpop.permute.xlu0 %866  ;;  %v914_v44 = vld [vmem:[#allocation2 + $0x8] sm:$0xff]  ;;  %462 = vst [vmem:[#allocation2 + $0x30] sm:$0xff] %v461_v31 }
  0x90   : > { %v915_v54 = vsel %vm3439_vm8, %v3445_v52, %v914_v44 }
  0x91   : > { %2208 = vrot.lane.b32.xlu1 %v3100_v36, %s3184_s28  ;;  %2192 = vrot.lane.b32.xlu0 %v3101_v37, %s3184_s28  ;;  %v1603_v36 = vrot.slane %v1601_v28, 1  ;;  %v1657_v37 = vshll.u32 %v3115_v24, 16  ;;  %v2374_v28 = vor.u32 %v2373_v12, %v2369_v2  ;;  %v1606_v2 = vshrl.u32 %v3129_v43, 16 }
  0x93   : > { %v1200_v5 = vpop.permute.xlu1 %1199  ;;  %v1184_v6 = vpop.permute.xlu0 %1183  ;;  %v1604_v46 = vor.u32 %v1603_v36, %v1599_v33  ;;  %v1659_v49 = vrot.slane %v1657_v37, 1  ;;  %v2429_v33 = vrot.slane %v2427_v18, 1 }
  0x94   : > { %v1258_v9 = vsel %vm3453_vm9, %v1200_v5, %v936_v4  ;;  %v1234_v10 = vsel %vm3453_vm9, %v1184_v6, %v1233_v53  ;;  %v939_v53 = vsel %vm3439_vm8, %v3443_v51, %v938_v38  ;;  %v1966_v51 = vrot.slane %v1964_v45, 7  ;;  %v484_v6 = vld [vmem:[#allocation2 + $0x70] sm:$0xff] }
  0x95   : > { %1259 = vst [vmem:[#allocation2 + $0x40] sm:$0xff] %v1258_v9  ;;  %1235 = vst [vmem:[#allocation2] sm:$0xff] %v1234_v10  ;;  %2477 = vrot.lane.b32.xlu1 %v2423_v60, %s3185_s29  ;;  %2461 = vrot.lane.b32.xlu0 %v2367_v63, %s3185_s29  ;;  %v3152_v60 = vld [vmem:[%s3247_s21 + $0x68] sm:$0xff]   ;;  %v1660_v52 = vor.u32 %v1659_v49, %v1655_v48 }
  0x96   : > { %v413_v4 = vshrl.u32 %v3152_v60, 16  ;;  %v416_v5 = vshll.u32 %v3152_v60, 16  ;;  %v1969_v16 = vor.u32 %v1967_v57, %v1966_v51  ;;  %v917_v60 = vld [vmem:[#allocation2 + $0x10] sm:$0xff] }
  0x97   : > { %v1410_v19 = vpop.permute.xlu1 %1409  ;;  %v1394_v21 = vpop.permute.xlu0 %1393 }
  0x98   : > { %1450 = vst.msk [vmem:[#allocation2 + $0x40] sm:$0xff] %vm1441_vm10, %v1410_v19  ;;  %1442 = vst.msk [vmem:[#allocation2] sm:$0xff] %vm1441_vm10, %v1394_v21  ;;  %v415_v13 = vrot.slane %v413_v4, 7  ;;  %v3125_v19 = vld [vmem:[%s3247_s21 + $0x30] sm:$0xff]  }
  0x99   : > { %876 = vrot.lane.b32.xlu1 %v802_v14, %s3179_s23  ;;  %607 = vrot.lane.b32.xlu0 %v3105_v11, %s3178_s22  ;;  %v3116_v11 = vld [vmem:[%s3247_s21 + $0x20] sm:$0xff]   ;;  %v3124_v14 = vld [vmem:[%s3247_s21 + $0x70] sm:$0xff]   ;;  %v1117_v41 = vshll.u32 %v3125_v19, 16 }
  0x9a   : > { %v418_v21 = vor.u32 %v416_v5, %v415_v13  ;;  %v1170_v34 = vshrl.u32 %v3124_v14, 16  ;;  %v1173_v38 = vshll.u32 %v3124_v14, 16  ;;  %v463_v14 = vld [vmem:[#allocation2 + $0x38] sm:$0xff] }
  0x9b   : > { %v616_v29 = vpop.permute.xlu1 %615  ;;  %v600_v30 = vpop.permute.xlu0 %599 }
  0x9c   : > { %651 = vst.msk [vmem:[#allocation2 + $0x58] sm:$0xff] %vm640_vm4, %v616_v29  ;;  %643 = vst.msk [vmem:[#allocation2 + $0x18] sm:$0xff] %vm640_vm4, %v600_v30  ;;  %v485_v27 = vsel %vm3341_vm3, %v418_v21, %v484_v6  ;;  %v804_v29 = vshrl.u32 %v3500_v59, 16  ;;  %v2425_v30 = vshrl.u32 %v3123_v3, 16  ;;  %v3131_v59 = vld [vmem:[%s3247_s21 + $0x28] sm:$0xff]  }
  0x9d   : > { %1193 = vrot.lane.b32.xlu1 %v1112_v25, %s3180_s24  ;;  %892 = vrot.lane.b32.xlu0 %v858_v26, %s3179_s23  ;;  %v3121_v26 = vld [vmem:[%s3247_s21 + $0x60] sm:$0xff]   ;;  %486 = vst [vmem:[#allocation2 + $0x70] sm:$0xff] %v485_v27  ;;  %v1918_v23 = vshll.u32 %v3131_v59, 16 }
  0x9e   : > { %v2430_v45 = vor.u32 %v2429_v33, %v2425_v30  ;;  %v3168_v30 = vld [vmem:[%s3247_s21 + $0x70] sm:$0xff]  }
  0x9f   : > { %v3485_v39 = vpop.permute.xlu1 %884  ;;  %v3487_v40 = vpop.permute.xlu0 %868 }
  0xa1   : > { %1403 = vrot.lane.b32.xlu1 %v3110_v32, %s3181_s25  ;;  %1209 = vrot.lane.b32.xlu0 %v1168_v35, %s3180_s24  ;;  %v808_v32 = vrot.slane %v806_v17, 1  ;;  %v1114_v35 = vshrl.u32 %v3125_v19, 16  ;;  %v3136_v17 = vld [vmem:[%s3247_s21 + $0x60] sm:$0xff]   ;;  %v1611_v19 = vor.u32 %v1610_v7, %v1606_v2 }
  0xa3   : > { %v1202_v55 = vpop.permute.xlu1 %1201  ;;  %v1186_v56 = vpop.permute.xlu0 %1185  ;;  %v809_v44 = vor.u32 %v808_v32, %v804_v29  ;;  %v2434_v32 = vshll.u32 %v3136_v17, 16 }
  0xa4   : > { %v1261_v61 = vsel %vm3453_vm9, %v1202_v55, %v939_v53  ;;  %v1237_v63 = vsel %vm3453_vm9, %v1186_v56, %v915_v54  ;;  %v1664_v53 = vshll.u32 %v3128_v42, 16  ;;  %v3130_v54 = vld [vmem:[%s3247_s21 + $0x68] sm:$0xff]   ;;  %v941_v55 = vld [vmem:[#allocation2 + $0x50] sm:$0xff] }
  0xa5   : > { %1262 = vst [vmem:[#allocation2 + $0x48] sm:$0xff] %v1261_v61  ;;  %1238 = vst [vmem:[#allocation2 + $0x8] sm:$0xff] %v1237_v63  ;;  %1690 = vrot.lane.b32.xlu1 %v1604_v46, %s3182_s26  ;;  %1419 = vrot.lane.b32.xlu0 %v3113_v47, %s3181_s25  ;;  %v1172_v46 = vrot.slane %v1170_v34, 7  ;;  %v1116_v47 = vrot.slane %v1114_v35, 7  ;;  %v3167_v61 = vld [vmem:[%s3247_s21 + $0x30] sm:$0xff]   ;;  %v942_v63 = vsel %vm3439_vm8, %v3485_v39, %v941_v55  ;;  %v1971_v8 = vshrl.u32 %v3130_v54, 16 }
  0xa6   : > { %v1666_v5 = vrot.slane %v1664_v53, 1  ;;  %v364_v6 = vshrl.u32 %v3167_v61, 16  ;;  %v3126_v39 = vld [vmem:[%s3247_s21 + $0x70] sm:$0xff]   ;;  %v423_v53 = vshll.u32 %v3168_v30, 16  ;;  %v2436_v58 = vrot.slane %v2434_v32, 1  ;;  %v920_v32 = vld [vmem:[#allocation2 + $0x18] sm:$0xff] }
  0xa7   : > { %v1412_v9 = vpop.permute.xlu1 %1411  ;;  %v1396_v10 = vpop.permute.xlu0 %1395  ;;  %v1175_v56 = vor.u32 %v1173_v38, %v1172_v46  ;;  %v1119_v57 = vor.u32 %v1117_v41, %v1116_v47  ;;  %v1973_v21 = vrot.slane %v1971_v8, 7  ;;  %v420_v38 = vshrl.u32 %v3168_v30, 16  ;;  %v1756_v41 = vld [vmem:[#allocation2 + $0x40] sm:$0xff]  ;;  %v944_v30 = vld [vmem:[#allocation2 + $0x58] sm:$0xff] }
  0xa8   : > { %1451 = vst.msk [vmem:[#allocation2 + $0x48] sm:$0xff] %vm1441_vm10, %v1412_v9  ;;  %1443 = vst.msk [vmem:[#allocation2 + $0x8] sm:$0xff] %vm1441_vm10, %v1396_v10  ;;  %v1915_v9 = vshrl.u32 %v3131_v59, 16  ;;  %v367_v10 = vshll.u32 %v3167_v61, 16 }
  0xa9   : > { %1997 = vrot.lane.b32.xlu1 %v1913_v0, %s3183_s27  ;;  %1706 = vrot.lane.b32.xlu0 %v1660_v52, %s3182_s26  ;;  %v918_v0 = vsel %vm3439_vm8, %v3487_v40, %v917_v60  ;;  %v1662_v52 = vshrl.u32 %v3128_v42, 16  ;;  %v3127_v40 = vld [vmem:[%s3247_s21 + $0x30] sm:$0xff]   ;;  %v1732_v42 = vld [vmem:[#allocation2] sm:$0xff]  ;;  %v422_v47 = vrot.slane %v420_v38, 7 }
  0xaa   : > { %v1917_v22 = vrot.slane %v1915_v9, 7  ;;  %v3138_v9 = vld [vmem:[%s3247_s21 + $0x70] sm:$0xff]  }
  0xab   : > { %v3519_v24 = vpop.permute.xlu1 %1698  ;;  %v3521_v25 = vpop.permute.xlu0 %1682  ;;  %v1667_v15 = vor.u32 %v1666_v5, %v1662_v52  ;;  %v3148_v38 = vld [vmem:[%s3247_s21 + $0x70] sm:$0xff]  }
  0xac   : > { %v1920_v35 = vor.u32 %v1918_v23, %v1917_v22  ;;  %v1757_v43 = vsel %vm3575_vm13, %v3519_v24, %v1756_v41  ;;  %v487_v24 = vld [vmem:[#allocation2 + $0x78] sm:$0xff] }
  0xad   : > { %2194 = vrot.lane.b32.xlu1 %v3116_v11, %s3184_s28  ;;  %2013 = vrot.lane.b32.xlu0 %v1969_v16, %s3183_s27  ;;  %v366_v11 = vrot.slane %v364_v6, 7  ;;  %v1974_v16 = vshll.u32 %v3130_v54, 16  ;;  %v3141_v22 = vld [vmem:[%s3247_s21 + $0x38] sm:$0xff]  }
  0xaf   : > { %v618_v36 = vpop.permute.xlu1 %617  ;;  %v602_v37 = vpop.permute.xlu0 %601  ;;  %v369_v18 = vor.u32 %v367_v10, %v366_v11  ;;  %v1976_v34 = vor.u32 %v1974_v16, %v1973_v21 }
  0xb0   : > { %652 = vst.msk [vmem:[#allocation2 + $0x60] sm:$0xff] %vm640_vm4, %v618_v36  ;;  %644 = vst.msk [vmem:[#allocation2 + $0x20] sm:$0xff] %vm640_vm4, %v602_v37  ;;  %v3139_v37 = vld [vmem:[%s3247_s21 + $0x38] sm:$0xff]  }
  0xb1   : > { %2463 = vrot.lane.b32.xlu1 %v2374_v28, %s3185_s29  ;;  %2210 = vrot.lane.b32.xlu0 %v3121_v26, %s3184_s28  ;;  %v3137_v26 = vld [vmem:[%s3247_s21 + $0x20] sm:$0xff]   ;;  %v464_v27 = vsel %vm3341_vm3, %v369_v18, %v463_v14  ;;  %v1121_v61 = vshrl.u32 %v3139_v37, 16  ;;  %v1124_v5 = vshll.u32 %v3139_v37, 16  ;;  %v3145_v14 = vld [vmem:[%s3247_s21 + $0x70] sm:$0xff]  }
  0xb2   : > { %465 = vst [vmem:[#allocation2 + $0x38] sm:$0xff] %v464_v27  ;;  %v2378_v36 = vshll.u32 %v3137_v26, 16  ;;  %v2376_v59 = vshrl.u32 %v3137_v26, 16  ;;  %v1978_v27 = vshrl.u32 %v3145_v14, 16 }
  0xb3   : > { %v3537_v48 = vpop.permute.xlu1 %886  ;;  %v3539_v49 = vpop.permute.xlu0 %870 }
  0xb4   : > { %v2380_v60 = vrot.slane %v2378_v36, 1 }
  0xb5   : > { %878 = vrot.lane.b32.xlu1 %v809_v44, %s3179_s23  ;;  %2479 = vrot.lane.b32.xlu0 %v2430_v45, %s3185_s29  ;;  %v1733_v44 = vsel %vm3575_vm13, %v3521_v25, %v1732_v42  ;;  %v3133_v25 = vld [vmem:[%s3247_s21 + $0x28] sm:$0xff]  }
  0xb7   : > { %v1204_v51 = vpop.permute.xlu1 %1203  ;;  %v1188_v1 = vpop.permute.xlu0 %1187 }
  0xb8   : > { %v1264_v3 = vsel %vm3453_vm9, %v1204_v51, %v942_v63  ;;  %v1240_v4 = vsel %vm3453_vm9, %v1188_v1, %v918_v0  ;;  %v3140_v63 = vld [vmem:[%s3247_s21 + $0x30] sm:$0xff]   ;;  %v425_v0 = vor.u32 %v423_v53, %v422_v47 }
  0xb9   : > { %1265 = vst [vmem:[#allocation2 + $0x50] sm:$0xff] %v1264_v3  ;;  %1241 = vst [vmem:[#allocation2 + $0x10] sm:$0xff] %v1240_v4  ;;  %1211 = vrot.lane.b32.xlu1 %v1175_v56, %s3180_s24  ;;  %1195 = vrot.lane.b32.xlu0 %v1119_v57, %s3180_s24  ;;  %v3132_v56 = vld [vmem:[%s3247_s21 + $0x68] sm:$0xff]   ;;  %v2432_v57 = vshrl.u32 %v3136_v17, 16  ;;  %v2381_v3 = vor.u32 %v2380_v60, %v2376_v59  ;;  %v1123_v4 = vrot.slane %v1121_v61, 7  ;;  %v1615_v6 = vshll.u32 %v3140_v63, 16 }
  0xba   : > { %v488_v52 = vsel %vm3341_vm3, %v425_v0, %v487_v24  ;;  %v1613_v8 = vshrl.u32 %v3140_v63, 16  ;;  %v3151_v59 = vld [vmem:[%s3247_s21 + $0x38] sm:$0xff]   ;;  %v860_v63 = vshrl.u32 %v3148_v38, 16 }
  0xbb   : > { %v1414_v12 = vpop.permute.xlu1 %1413  ;;  %v1398_v13 = vpop.permute.xlu0 %1397  ;;  %v2437_v2 = vor.u32 %v2436_v58, %v2432_v57  ;;  %489 = vst [vmem:[#allocation2 + $0x78] sm:$0xff] %v488_v52  ;;  %v1126_v10 = vor.u32 %v1124_v5, %v1123_v4  ;;  %v1617_v11 = vrot.slane %v1615_v6, 1  ;;  %v1622_v4 = vshll.u32 %v3151_v59, 16  ;;  %v3155_v5 = vld [vmem:[%s3247_s21 + $0x78] sm:$0xff]   ;;  %v1759_v6 = vld [vmem:[#allocation2 + $0x48] sm:$0xff] }
  0xbc   : > { %1452 = vst.msk [vmem:[#allocation2 + $0x50] sm:$0xff] %vm1441_vm10, %v1414_v12  ;;  %1444 = vst.msk [vmem:[#allocation2 + $0x10] sm:$0xff] %vm1441_vm10, %v1398_v13 }
  0xbd   : > { %1421 = vrot.lane.b32.xlu1 %v3126_v39, %s3181_s25  ;;  %1405 = vrot.lane.b32.xlu0 %v3127_v40, %s3181_s25  ;;  %v3142_v39 = vld [vmem:[%s3247_s21 + $0x30] sm:$0xff]   ;;  %v1618_v21 = vor.u32 %v1617_v11, %v1613_v8 }
  0xbe   : > { %v3143_v40 = vld [vmem:[%s3247_s21 + $0x70] sm:$0xff]   ;;  %v1922_v12 = vshrl.u32 %v3142_v39, 16  ;;  %v1925_v17 = vshll.u32 %v3142_v39, 16  ;;  %v1735_v39 = vld [vmem:[#allocation2 + $0x8] sm:$0xff] }
  0xbf   : > { %v3568_v28 = vpop.permute.xlu1 %1700  ;;  %v3570_v29 = vpop.permute.xlu0 %1684  ;;  %v1671_v13 = vshll.u32 %v3143_v40, 16  ;;  %v1669_v18 = vshrl.u32 %v3143_v40, 16 }
  0xc0   : > { %v1924_v23 = vrot.slane %v1922_v12, 7  ;;  %v1760_v40 = vsel %vm3575_vm13, %v3568_v28, %v1759_v6 }
  0xc1   : > { %1708 = vrot.lane.b32.xlu1 %v1667_v15, %s3182_s26  ;;  %1692 = vrot.lane.b32.xlu0 %v1611_v19, %s3182_s26  ;;  %v3146_v19 = vld [vmem:[%s3247_s21 + $0x28] sm:$0xff]   ;;  %v1673_v26 = vrot.slane %v1671_v13, 1  ;;  %v1620_v13 = vshrl.u32 %v3151_v59, 16 }
  0xc3   : > { %v2008_v45 = vpop.permute.xlu1 %2007  ;;  %v1992_v46 = vpop.permute.xlu0 %1991 }
  0xc4   : > { %v2063_v54 = vsel %vm3582_vm14, %v2008_v45, %v1757_v43  ;;  %v2039_v55 = vsel %vm3582_vm14, %v1992_v46, %v1733_v44  ;;  %v2385_v43 = vshll.u32 %v3146_v19, 16  ;;  %v1674_v44 = vor.u32 %v1673_v26, %v1669_v18  ;;  %v3149_v46 = vld [vmem:[%s3247_s21 + $0x68] sm:$0xff]  }
  0xc5   : > { %2064 = vst [vmem:[#allocation2 + $0x40] sm:$0xff] %v2063_v54  ;;  %2040 = vst [vmem:[#allocation2] sm:$0xff] %v2039_v55  ;;  %2015 = vrot.lane.b32.xlu1 %v1976_v34, %s3183_s27  ;;  %1999 = vrot.lane.b32.xlu0 %v1920_v35, %s3183_s27  ;;  %v945_v34 = vsel %vm3439_vm8, %v3537_v48, %v944_v30  ;;  %v921_v35 = vsel %vm3439_vm8, %v3539_v49, %v920_v32  ;;  %v1980_v49 = vrot.slane %v1978_v27, 7  ;;  %v3144_v55 = vld [vmem:[%s3247_s21 + $0x30] sm:$0xff]  }
  0xc6   : > { %v1927_v48 = vor.u32 %v1925_v17, %v1924_v23  ;;  %v1981_v45 = vshll.u32 %v3145_v14, 16  ;;  %v862_v54 = vshll.u32 %v3148_v38, 16  ;;  %v2387_v57 = vrot.slane %v2385_v43, 1  ;;  %v3156_v14 = vld [vmem:[%s3247_s21 + $0x30] sm:$0xff]  }
  0xc7   : > { %v2205_v51 = vpop.permute.xlu1 %2204  ;;  %v2189_v1 = vpop.permute.xlu0 %2188  ;;  %v2441_v24 = vshll.u32 %v3149_v46, 16  ;;  %v2439_v52 = vshrl.u32 %v3149_v46, 16  ;;  %v1624_v17 = vrot.slane %v1622_v4, 1  ;;  %v1985_v18 = vshrl.u32 %v3155_v5, 16 }
  0xc8   : > { %2242 = vst.msk [vmem:[#allocation2 + $0x40] sm:$0xff] %vm2233_vm15, %v2205_v51  ;;  %2234 = vst.msk [vmem:[#allocation2] sm:$0xff] %vm2233_vm15, %v2189_v1  ;;  %v1983_v58 = vor.u32 %v1981_v45, %v1980_v49  ;;  %v864_v0 = vrot.slane %v862_v54, 1  ;;  %v3147_v1 = vld [vmem:[%s3247_s21 + $0x70] sm:$0xff]   ;;  %v1988_v32 = vshll.u32 %v3155_v5, 16  ;;  %v3154_v49 = vld [vmem:[%s3247_s21 + $0x38] sm:$0xff]  }
  0xc9   : > { %2212 = vrot.lane.b32.xlu1 %v3132_v56, %s3184_s28  ;;  %2196 = vrot.lane.b32.xlu0 %v3133_v25, %s3184_s28  ;;  %v2383_v56 = vshrl.u32 %v3146_v19, 16  ;;  %v3150_v25 = vld [vmem:[%s3247_s21 + $0x38] sm:$0xff]   ;;  %v1625_v27 = vor.u32 %v1624_v17, %v1620_v13  ;;  %v1987_v30 = vrot.slane %v1985_v18, 7  ;;  %v3161_v54 = vld [vmem:[%s3247_s21 + $0x40] sm:$0xff]  }
  0xca   : > { %v1932_v12 = vshll.u32 %v3150_v25, 16  ;;  %v1939_v6 = vshll.u32 %v3161_v54, 16  ;;  %v3166_v18 = vld [vmem:[%s3247_s21 + $0x40] sm:$0xff]  }
  0xcb   : > { %v620_v20 = vpop.permute.xlu1 %619  ;;  %v604_v7 = vpop.permute.xlu0 %603  ;;  %v2388_v51 = vor.u32 %v2387_v57, %v2383_v56  ;;  %v1990_v45 = vor.u32 %v1988_v32, %v1987_v30 }
  0xcc   : > { %653 = vst.msk [vmem:[#allocation2 + $0x68] sm:$0xff] %vm640_vm4, %v620_v20  ;;  %645 = vst.msk [vmem:[#allocation2 + $0x28] sm:$0xff] %vm640_vm4, %v604_v7  ;;  %v1736_v20 = vsel %vm3575_vm13, %v3570_v29, %v1735_v39  ;;  %v3164_v39 = vld [vmem:[%s3247_s21 + $0x78] sm:$0xff]  }
  0xcd   : > { %2481 = vrot.lane.b32.xlu1 %v2437_v2, %s3185_s29  ;;  %2465 = vrot.lane.b32.xlu0 %v2381_v3, %s3185_s29  ;;  %v2443_v2 = vrot.slane %v2441_v24, 1  ;;  %v1929_v3 = vshrl.u32 %v3150_v25, 16  ;;  %v3162_v24 = vld [vmem:[%s3247_s21 + $0x38] sm:$0xff]  }
  0xce   : > { %v3157_v25 = vld [vmem:[%s3247_s21 + $0x78] sm:$0xff]  }
  0xcf   : > { %v3616_v15 = vpop.permute.xlu1 %888  ;;  %v3618_v16 = vpop.permute.xlu0 %872  ;;  %v2444_v28 = vor.u32 %v2443_v2, %v2439_v52  ;;  %v1931_v29 = vrot.slane %v1929_v3, 7  ;;  %v2506_v38 = vld [vmem:[#allocation2] sm:$0xff]  ;;  %v2399_v2 = vshll.u32 %v3162_v24, 16 }
  0xd1   : > { %623 = vrot.lane.b32.xlu1 %v3138_v9, %s3178_s22  ;;  %1197 = vrot.lane.b32.xlu0 %v1126_v10, %s3180_s24  ;;  %v865_v9 = vor.u32 %v864_v0, %v860_v63  ;;  %v1934_v26 = vor.u32 %v1932_v12, %v1931_v29 }
  0xd3   : > { %v1206_v36 = vpop.permute.xlu1 %1205  ;;  %v1190_v37 = vpop.permute.xlu0 %1189 }
  0xd4   : > { %v1267_v41 = vsel %vm3453_vm9, %v1206_v36, %v945_v34  ;;  %v1243_v42 = vsel %vm3453_vm9, %v1190_v37, %v921_v35  ;;  %v3158_v34 = vld [vmem:[%s3247_s21 + $0x78] sm:$0xff]   ;;  %v3159_v35 = vld [vmem:[%s3247_s21 + $0x70] sm:$0xff]   ;;  %v2530_v37 = vld [vmem:[#allocation2 + $0x40] sm:$0xff] }
  0xd5   : > { %1268 = vst [vmem:[#allocation2 + $0x58] sm:$0xff] %v1267_v41  ;;  %1244 = vst [vmem:[#allocation2 + $0x18] sm:$0xff] %v1243_v42  ;;  %1694 = vrot.lane.b32.xlu1 %v1618_v21, %s3182_s26  ;;  %1407 = vrot.lane.b32.xlu0 %v3141_v22, %s3181_s25  ;;  %v2392_v22 = vshll.u32 %v3156_v14, 16  ;;  %v2446_v63 = vshrl.u32 %v3159_v35, 16 }
  0xd7   : > { %v1416_v47 = vpop.permute.xlu1 %1415  ;;  %v1400_v53 = vpop.permute.xlu0 %1399 }
  0xd8   : > { %1453 = vst.msk [vmem:[#allocation2 + $0x58] sm:$0xff] %vm1441_vm10, %v1416_v47  ;;  %1445 = vst.msk [vmem:[#allocation2 + $0x18] sm:$0xff] %vm1441_vm10, %v1400_v53  ;;  %v1177_v47 = vshrl.u32 %v3158_v34, 16  ;;  %v2448_v53 = vshll.u32 %v3159_v35, 16  ;;  %v2406_v35 = vshll.u32 %v3166_v18, 16 }
  0xd9   : > { %2001 = vrot.lane.b32.xlu1 %v1927_v48, %s3183_s27  ;;  %1710 = vrot.lane.b32.xlu0 %v1674_v44, %s3182_s26  ;;  %v2390_v48 = vshrl.u32 %v3156_v14, 16  ;;  %v2394_v44 = vrot.slane %v2392_v22, 1  ;;  %v2397_v14 = vshrl.u32 %v3162_v24, 16 }
  0xda   : > { %v1179_v59 = vrot.slane %v1177_v47, 7  ;;  %v2450_v0 = vrot.slane %v2448_v53, 1 }
  0xdb   : > { %v3645_v60 = vpop.permute.xlu1 %1702  ;;  %v3647_v61 = vpop.permute.xlu0 %1686  ;;  %v2395_v57 = vor.u32 %v2394_v44, %v2390_v48  ;;  %v1762_v48 = vld [vmem:[#allocation2 + $0x50] sm:$0xff] }
  0xdc   : > { %v2451_v4 = vor.u32 %v2450_v0, %v2446_v63  ;;  %v1738_v44 = vld [vmem:[#allocation2 + $0x10] sm:$0xff] }
  0xdd   : > { %2198 = vrot.lane.b32.xlu1 %v3144_v55, %s3184_s28  ;;  %2017 = vrot.lane.b32.xlu0 %v1983_v58, %s3183_s27  ;;  %v1180_v58 = vshll.u32 %v3158_v34, 16 }
  0xdf   : > { %v2010_v7 = vpop.permute.xlu1 %2009  ;;  %v1994_v8 = vpop.permute.xlu0 %1993  ;;  %v1182_v3 = vor.u32 %v1180_v58, %v1179_v59  ;;  %v2666_v58 = vld [vmem:[%s3889_s3] sm:$0xff] }
  0xe0   : > { %v2066_v10 = vsel %vm3582_vm14, %v2010_v7, %v1760_v40  ;;  %v2042_v11 = vsel %vm3582_vm14, %v1994_v8, %v1736_v20  ;;  %v3165_v40 = vld [vmem:[%s3247_s21 + $0x78] sm:$0xff]   ;;  %v947_v20 = vld [vmem:[#allocation2 + $0x60] sm:$0xff] }
  0xe1   : > { %2067 = vst [vmem:[#allocation2 + $0x48] sm:$0xff] %v2066_v10  ;;  %2043 = vst [vmem:[#allocation2 + $0x8] sm:$0xff] %v2042_v11  ;;  %2467 = vrot.lane.b32.xlu1 %v2388_v51, %s3185_s29  ;;  %2214 = vrot.lane.b32.xlu0 %v3147_v1, %s3184_s28  ;;  %v1936_v51 = vshrl.u32 %v3161_v54, 16  ;;  %v923_v7 = vld [vmem:[#allocation2 + $0x20] sm:$0xff]  ;;  %v948_v8 = vsel %vm3439_vm8, %v3616_v15, %v947_v20  ;;  %v3160_v15 = vld [vmem:[%s3247_s21 + $0x78] sm:$0xff]   ;;  %v1678_v17 = vshll.u32 %v3165_v40, 16 }
  0xe2   : > { %v1676_v32 = vshrl.u32 %v3165_v40, 16 }
  0xe3   : > { %v2207_v19 = vpop.permute.xlu1 %2206  ;;  %v2191_v21 = vpop.permute.xlu0 %2190  ;;  %v1938_v5 = vrot.slane %v1936_v51, 7  ;;  %v1680_v34 = vrot.slane %v1678_v17, 1 }
  0xe4   : > { %2243 = vst.msk [vmem:[#allocation2 + $0x48] sm:$0xff] %vm2233_vm15, %v2207_v19  ;;  %2235 = vst.msk [vmem:[#allocation2 + $0x8] sm:$0xff] %vm2233_vm15, %v2191_v21 }
  0xe5   : > { %894 = vrot.lane.b32.xlu1 %v865_v9, %s3179_s23  ;;  %2483 = vrot.lane.b32.xlu0 %v2444_v28, %s3185_s29  ;;  %v924_v9 = vsel %vm3439_vm8, %v3618_v16, %v923_v7  ;;  %v2401_v28 = vrot.slane %v2399_v2, 1  ;;  %v1941_v29 = vor.u32 %v1939_v6, %v1938_v5  ;;  %v2455_v16 = vshll.u32 %v3164_v39, 16  ;;  %v926_v5 = vld [vmem:[#allocation2 + $0x28] sm:$0xff] }
  0xe6   : > { %v950_v7 = vld [vmem:[#allocation2 + $0x68] sm:$0xff] }
  0xe7   : > { %v2476_v36 = vpop.permute.xlu1 %2475  ;;  %v2460_v41 = vpop.permute.xlu0 %2459  ;;  %v2402_v22 = vor.u32 %v2401_v28, %v2397_v14  ;;  %v2457_v30 = vrot.slane %v2455_v16, 1 }
  0xe8   : > { %v2531_v42 = vsel %vm3671_vm2, %v2476_v36, %v2530_v37  ;;  %v2507_v43 = vsel %vm3671_vm2, %v2460_v41, %v2506_v38  ;;  %v1681_v41 = vor.u32 %v1680_v34, %v1676_v32 }
  0xe9   : > { %2532 = vst [vmem:[#allocation2 + $0x40] sm:$0xff] %v2531_v42  ;;  %2508 = vst [vmem:[#allocation2] sm:$0xff] %v2507_v43  ;;  %2003 = vrot.lane.b32.xlu1 %v1934_v26, %s3183_s27  ;;  %1696 = vrot.lane.b32.xlu0 %v1625_v27, %s3182_s26  ;;  %v2578_v46 = vsel %vm199_vm0, %v2507_v43, 0  ;;  %v2453_v26 = vshrl.u32 %v3164_v39, 16  ;;  %v3163_v27 = vld [vmem:[%s3247_s21 + $0x40] sm:$0xff]   ;;  %v2408_v43 = vrot.slane %v2406_v35, 1 }
  0xea   : > { %3004 = vmatprep.subr.msk.bf16.mxu0 %vm199_vm0, %v2531_v42  ;;  %v2404_v42 = vshrl.u32 %v3166_v18, 16 }
  0xeb   : > { %v622_v55 = vpop.permute.xlu1 %621  ;;  %v606_v56 = vpop.permute.xlu0 %605  ;;  %2987 = vmatpush3.bf16.xpose.msra.mxu0 %v2578_v46  ;;  %v2458_v38 = vor.u32 %v2457_v30, %v2453_v26  ;;  %v1739_v46 = vsel %vm3575_vm13, %v3647_v61, %v1738_v44  ;;  %v2509_v63 = vld [vmem:[#allocation2 + $0x8] sm:$0xff] }
  0xec   : > { %654 = vst.msk [vmem:[#allocation2 + $0x70] sm:$0xff] %vm640_vm4, %v622_v55  ;;  %646 = vst.msk [vmem:[#allocation2 + $0x30] sm:$0xff] %vm640_vm4, %v606_v56 }
  0xed   : > { %2200 = vrot.lane.b32.xlu1 %v3154_v49, %s3184_s28  ;;  %2019 = vrot.lane.b32.xlu0 %v1990_v45, %s3183_s27  ;;  %v3729_v49 = vld [vmem:[%s3887_s1] sm:$0xf]  ;;  %v1763_v45 = vsel %vm3575_vm13, %v3645_v60, %v1762_v48  ;;  %v2409_v60 = vor.u32 %v2408_v43, %v2404_v42 }
  0xee   : > { %3002 = vmatprep.mubr.msk.bf16.mxu0 %vm199_vm0, %v3729_v49 }
  0xef   : > { %v3693_v1 = vpop.permute.xlu1 %890  ;;  %v3695_v52 = vpop.permute.xlu0 %874 }
  0xf0   : > { %v927_v6 = vsel %vm3439_vm8, %v3695_v52, %v926_v5 }
  0xf1   : > { %2469 = vrot.lane.b32.xlu1 %v2395_v57, %s3185_s29  ;;  %2216 = vrot.lane.b32.xlu0 %v3157_v25, %s3184_s28  ;;  %v2568_v57 = vld [vmem:[%s3888_s2] sm:$0xff]  ;;  %v2533_v25 = vld [vmem:[#allocation2 + $0x48] sm:$0xff] }
  0xf3   : > { %v1208_v10 = vpop.permute.xlu1 %1207  ;;  %v1192_v11 = vpop.permute.xlu0 %1191 }
  0xf4   : > { %v1270_v12 = vsel %vm3453_vm9, %v1208_v10, %v948_v8  ;;  %v1246_v13 = vsel %vm3453_vm9, %v1192_v11, %v924_v9  ;;  %v951_v8 = vsel %vm3439_vm8, %v3693_v1, %v950_v7 }
  0xf5   : > { %1271 = vst [vmem:[#allocation2 + $0x60] sm:$0xff] %v1270_v12  ;;  %1247 = vst [vmem:[#allocation2 + $0x20] sm:$0xff] %v1246_v13  ;;  %1213 = vrot.lane.b32.xlu1 %v1182_v3, %s3180_s24  ;;  %2485 = vrot.lane.b32.xlu0 %v2451_v4, %s3185_s29  ;;  %v1741_v13 = vld [vmem:[#allocation2 + $0x18] sm:$0xff] }
  0xf7   : > { %v1418_v19 = vpop.permute.xlu1 %1417  ;;  %v1402_v21 = vpop.permute.xlu0 %1401 }
  0xf8   : > { %1454 = vst.msk [vmem:[#allocation2 + $0x60] sm:$0xff] %vm1441_vm10, %v1418_v19  ;;  %1446 = vst.msk [vmem:[#allocation2 + $0x20] sm:$0xff] %vm1441_vm10, %v1402_v21 }
  0xf9   : > { %1423 = vrot.lane.b32.xlu1 %v3160_v15, %s3181_s25  ;;  %2005 = vrot.lane.b32.xlu0 %v1941_v29, %s3183_s27  ;;  %v1765_v29 = vld [vmem:[#allocation2 + $0x58] sm:$0xff] }
  0xfb   : > { %v3720_v36 = vpop.permute.xlu1 %1704  ;;  %v3722_v37 = vpop.permute.xlu0 %1688 }
  0xfc   : > { %v1742_v14 = vsel %vm3575_vm13, %v3722_v37, %v1741_v13  ;;  %v1766_v16 = vsel %vm3575_vm13, %v3720_v36, %v1765_v29  ;;  %v929_v37 = vld [vmem:[#allocation2 + $0x30] sm:$0xff] }
  0xfd   : > { %2471 = vrot.lane.b32.xlu1 %v2402_v22, %s3185_s29  ;;  %2202 = vrot.lane.b32.xlu0 %v3163_v27, %s3184_s28 }
  0xff   : > { %v2012_v47 = vpop.permute.xlu1 %2011  ;;  %v1996_v53 = vpop.permute.xlu0 %1995 }
 0x100   : > { %v2069_v54 = vsel %vm3582_vm14, %v2012_v47, %v1763_v45  ;;  %v2045_v55 = vsel %vm3582_vm14, %v1996_v53, %v1739_v46 }
 0x101   : > { %2070 = vst [vmem:[#allocation2 + $0x50] sm:$0xff] %v2069_v54  ;;  %2046 = vst [vmem:[#allocation2 + $0x10] sm:$0xff] %v2045_v55  ;;  %2487 = vrot.lane.b32.xlu0 %v2458_v38, %s3185_s29  ;;  %1712 = vrot.lane.b32.xlu1 %v1681_v41, %s3182_s26  ;;  %v953_v38 = vld [vmem:[#allocation2 + $0x70] sm:$0xff]  ;;  %v1744_v55 = vld [vmem:[#allocation2 + $0x20] sm:$0xff] }
 0x103   : > { %v2209_v56 = vpop.permute.xlu1 %2208  ;;  %v2193_v61 = vpop.permute.xlu0 %2192 }
 0x104   : > { %2244 = vst.msk [vmem:[#allocation2 + $0x50] sm:$0xff] %vm2233_vm15, %v2209_v56  ;;  %2236 = vst.msk [vmem:[#allocation2 + $0x10] sm:$0xff] %vm2233_vm15, %v2193_v61 }
 0x105   : > { %2473 = vrot.lane.b32.xlu0 %v2409_v60, %s3185_s29  ;;  %2571 = vperm.xlu1 %3029, %v2568_v57   ;;  %v1768_v60 = vld [vmem:[#allocation2 + $0x60] sm:$0xff] }
 0x107   : > { %v2478_v24 = vpop.permute.xlu1 %2477  ;;  %v2462_v59 = vpop.permute.xlu0 %2461 }
 0x108   : > { %v2534_v0 = vsel %vm3671_vm2, %v2478_v24, %v2533_v25  ;;  %v2510_v51 = vsel %vm3671_vm2, %v2462_v59, %v2509_v63 }
 0x109   : > { %2535 = vst [vmem:[#allocation2 + $0x48] sm:$0xff] %v2534_v0  ;;  %2511 = vst [vmem:[#allocation2 + $0x8] sm:$0xff] %v2510_v51  ;;  %3005 = vmatprep.subr.msk.bf16.mxu0 %vm199_vm0, %v2534_v0  ;;  %v2581_v2 = vsel %vm199_vm0, %v2510_v51, 0  ;;  %2671 = vperm.xlu0 %3030, %v2666_v58  }
 0x10a   : > { %2989 = vmatpush3.bf16.xpose.msra.mxu0 %v2581_v2 }
 0x10b   : > { %v877_v3 = vpop.permute.xlu1 %876  ;;  %v608_v4 = vpop.permute.xlu0 %607  ;;  %v2512_v22 = vld [vmem:[#allocation2 + $0x10] sm:$0xff] }
 0x10c   : > { %647 = vst.msk [vmem:[#allocation2 + $0x38] sm:$0xff] %vm640_vm4, %v608_v4  ;;  %v2536_v34 = vld [vmem:[#allocation2 + $0x50] sm:$0xff]  ;;  %v930_v41 = vsel %vm3439_vm8, %v877_v3, %v929_v37 }
 0x10f   : > { %v1194_v39 = vpop.permute.xlu1 %1193  ;;  %v893_v40 = vpop.permute.xlu0 %892 }
 0x110   : > { %v1249_v20 = vsel %vm3453_vm9, %v1194_v39, %v927_v6  ;;  %v954_v42 = vsel %vm3439_vm8, %v893_v40, %v953_v38 }
 0x111   : > { %1250 = vst [vmem:[#allocation2 + $0x28] sm:$0xff] %v1249_v20 }
 0x113   : > { %v1404_v9 = vpop.permute.xlu1 %1403  ;;  %v1210_v10 = vpop.permute.xlu0 %1209  ;;  %v932_v39 = vld [vmem:[#allocation2 + $0x38] sm:$0xff] }
 0x114   : > { %1447 = vst.msk [vmem:[#allocation2 + $0x28] sm:$0xff] %vm1441_vm10, %v1404_v9  ;;  %v1273_v11 = vsel %vm3453_vm9, %v1210_v10, %v951_v8 }
 0x115   : > { %1274 = vst [vmem:[#allocation2 + $0x68] sm:$0xff] %v1273_v11 }
 0x117   : > { %v1691_v52 = vpop.permute.xlu1 %1690  ;;  %v1420_v12 = vpop.permute.xlu0 %1419 }
 0x118   : > { %1455 = vst.msk [vmem:[#allocation2 + $0x68] sm:$0xff] %vm1441_vm10, %v1420_v12  ;;  %v1745_v56 = vsel %vm3575_vm13, %v1691_v52, %v1744_v55 }
 0x11b   : > { %v1998_v28 = vpop.permute.xlu1 %1997  ;;  %v1707_v15 = vpop.permute.xlu0 %1706  ;;  %v1747_v11 = vld [vmem:[#allocation2 + $0x28] sm:$0xff] }
 0x11c   : > { %v2048_v1 = vsel %vm3582_vm14, %v1998_v28, %v1742_v14  ;;  %v1769_v61 = vsel %vm3575_vm13, %v1707_v15, %v1768_v60 }
 0x11d   : > { %2049 = vst [vmem:[#allocation2 + $0x18] sm:$0xff] %v2048_v1 }
 0x11f   : > { %v2195_v17 = vpop.permute.xlu1 %2194  ;;  %v2014_v18 = vpop.permute.xlu0 %2013  ;;  %v1771_v28 = vld [vmem:[#allocation2 + $0x68] sm:$0xff] }
 0x120   : > { %2237 = vst.msk [vmem:[#allocation2 + $0x18] sm:$0xff] %vm2233_vm15, %v2195_v17  ;;  %v2072_v19 = vsel %vm3582_vm14, %v2014_v18, %v1766_v16 }
 0x121   : > { %2073 = vst [vmem:[#allocation2 + $0x58] sm:$0xff] %v2072_v19 }
 0x123   : > { %v2464_v21 = vpop.permute.xlu1 %2463  ;;  %v2211_v26 = vpop.permute.xlu0 %2210 }
 0x124   : > { %v2513_v27 = vsel %vm3671_vm2, %v2464_v21, %v2512_v22  ;;  %2245 = vst.msk [vmem:[#allocation2 + $0x58] sm:$0xff] %vm2233_vm15, %v2211_v26 }
 0x125   : > { %2514 = vst [vmem:[#allocation2 + $0x10] sm:$0xff] %v2513_v27  ;;  %v2584_v36 = vsel %vm199_vm0, %v2513_v27, 0 }
 0x127   : > { %v879_v30 = vpop.permute.xlu1 %878  ;;  %v2480_v32 = vpop.permute.xlu0 %2479  ;;  %v2515_v3 = vld [vmem:[#allocation2 + $0x18] sm:$0xff] }
 0x128   : > { %v2537_v35 = vsel %vm3671_vm2, %v2480_v32, %v2536_v34  ;;  %v933_v40 = vsel %vm3439_vm8, %v879_v30, %v932_v39 }
 0x129   : > { %2538 = vst [vmem:[#allocation2 + $0x50] sm:$0xff] %v2537_v35  ;;  %3006 = vmatprep.subr.msk.bf16.mxu0 %vm199_vm0, %v2537_v35 }
 0x12a   : > { %2991 = vmatpush3.bf16.xpose.msra.mxu0 %v2584_v36 }
 0x12b   : > { %v1212_v43 = vpop.permute.xlu1 %1211  ;;  %v1196_v48 = vpop.permute.xlu0 %1195  ;;  %v2539_v51 = vld [vmem:[#allocation2 + $0x58] sm:$0xff] }
 0x12c   : > { %v1276_v44 = vsel %vm3453_vm9, %v1212_v43, %v954_v42  ;;  %v1252_v45 = vsel %vm3453_vm9, %v1196_v48, %v930_v41 }
 0x12d   : > { %1277 = vst [vmem:[#allocation2 + $0x70] sm:$0xff] %v1276_v44  ;;  %1253 = vst [vmem:[#allocation2 + $0x30] sm:$0xff] %v1252_v45 }
 0x12f   : > { %v1422_v46 = vpop.permute.xlu1 %1421  ;;  %v1406_v47 = vpop.permute.xlu0 %1405 }
 0x130   : > { %1456 = vst.msk [vmem:[#allocation2 + $0x70] sm:$0xff] %vm1441_vm10, %v1422_v46  ;;  %1448 = vst.msk [vmem:[#allocation2 + $0x30] sm:$0xff] %vm1441_vm10, %v1406_v47 }
 0x133   : > { %v1709_v53 = vpop.permute.xlu1 %1708  ;;  %v1693_v54 = vpop.permute.xlu0 %1692 }
 0x134   : > { %v1748_v52 = vsel %vm3575_vm13, %v1693_v54, %v1747_v11  ;;  %v1772_v15 = vsel %vm3575_vm13, %v1709_v53, %v1771_v28 }
 0x137   : > { %v2016_v57 = vpop.permute.xlu1 %2015  ;;  %v2000_v58 = vpop.permute.xlu0 %1999  ;;  %v1750_v34 = vld [vmem:[#allocation2 + $0x30] sm:$0xff] }
 0x138   : > { %v2075_v24 = vsel %vm3582_vm14, %v2016_v57, %v1769_v61  ;;  %v2051_v25 = vsel %vm3582_vm14, %v2000_v58, %v1745_v56  ;;  %v1774_v41 = vld [vmem:[#allocation2 + $0x70] sm:$0xff] }
 0x139   : > { %2076 = vst [vmem:[#allocation2 + $0x60] sm:$0xff] %v2075_v24  ;;  %2052 = vst [vmem:[#allocation2 + $0x20] sm:$0xff] %v2051_v25 }
 0x13b   : > { %v2213_v59 = vpop.permute.xlu1 %2212  ;;  %v2197_v63 = vpop.permute.xlu0 %2196 }
 0x13c   : > { %2246 = vst.msk [vmem:[#allocation2 + $0x60] sm:$0xff] %vm2233_vm15, %v2213_v59  ;;  %2238 = vst.msk [vmem:[#allocation2 + $0x20] sm:$0xff] %vm2233_vm15, %v2197_v63 }
 0x13f   : > { %v2482_v0 = vpop.permute.xlu1 %2481  ;;  %v2466_v2 = vpop.permute.xlu0 %2465 }
 0x140   : > { %v2540_v4 = vsel %vm3671_vm2, %v2482_v0, %v2539_v51  ;;  %v2516_v5 = vsel %vm3671_vm2, %v2466_v2, %v2515_v3 }
 0x141   : > { %2541 = vst [vmem:[#allocation2 + $0x58] sm:$0xff] %v2540_v4  ;;  %2517 = vst [vmem:[#allocation2 + $0x18] sm:$0xff] %v2516_v5  ;;  %3007 = vmatprep.subr.msk.bf16.mxu0 %vm199_vm0, %v2540_v4  ;;  %v2587_v6 = vsel %vm199_vm0, %v2516_v5, 0 }
 0x142   : > { %2993 = vmatpush3.bf16.xpose.msra.mxu0 %v2587_v6 }
 0x143   : > { %v624_v20 = vpop.permute.xlu1 %623  ;;  %v1198_v7 = vpop.permute.xlu0 %1197  ;;  %v2518_v18 = vld [vmem:[#allocation2 + $0x20] sm:$0xff] }
 0x144   : > { %655 = vst.msk [vmem:[#allocation2 + $0x78] sm:$0xff] %vm640_vm4, %v624_v20  ;;  %v1255_v8 = vsel %vm3453_vm9, %v1198_v7, %v933_v40  ;;  %v2542_v27 = vld [vmem:[#allocation2 + $0x60] sm:$0xff] }
 0x145   : > { %1256 = vst [vmem:[#allocation2 + $0x38] sm:$0xff] %v1255_v8 }
 0x147   : > { %v1695_v9 = vpop.permute.xlu1 %1694  ;;  %v1408_v10 = vpop.permute.xlu0 %1407 }
 0x148   : > { %1449 = vst.msk [vmem:[#allocation2 + $0x38] sm:$0xff] %vm1441_vm10, %v1408_v10  ;;  %v1751_v35 = vsel %vm3575_vm13, %v1695_v9, %v1750_v34 }
 0x14b   : > { %v2002_v12 = vpop.permute.xlu1 %2001  ;;  %v1711_v13 = vpop.permute.xlu0 %1710  ;;  %v956_v54 = vld [vmem:[#allocation2 + $0x78] sm:$0xff] }
 0x14c   : > { %v2054_v14 = vsel %vm3582_vm14, %v2002_v12, %v1748_v52  ;;  %v1775_v42 = vsel %vm3575_vm13, %v1711_v13, %v1774_v41 }
 0x14d   : > { %2055 = vst [vmem:[#allocation2 + $0x28] sm:$0xff] %v2054_v14 }
 0x14f   : > { %v2199_v1 = vpop.permute.xlu1 %2198  ;;  %v2018_v29 = vpop.permute.xlu0 %2017  ;;  %v1753_v25 = vld [vmem:[#allocation2 + $0x38] sm:$0xff] }
 0x150   : > { %2239 = vst.msk [vmem:[#allocation2 + $0x28] sm:$0xff] %vm2233_vm15, %v2199_v1  ;;  %v2078_v16 = vsel %vm3582_vm14, %v2018_v29, %v1772_v15 }
 0x151   : > { %2079 = vst [vmem:[#allocation2 + $0x68] sm:$0xff] %v2078_v16 }
 0x153   : > { %v2468_v17 = vpop.permute.xlu1 %2467  ;;  %v2215_v19 = vpop.permute.xlu0 %2214 }
 0x154   : > { %v2519_v21 = vsel %vm3671_vm2, %v2468_v17, %v2518_v18  ;;  %2247 = vst.msk [vmem:[#allocation2 + $0x68] sm:$0xff] %vm2233_vm15, %v2215_v19 }
 0x155   : > { %2520 = vst [vmem:[#allocation2 + $0x20] sm:$0xff] %v2519_v21  ;;  %v2590_v32 = vsel %vm199_vm0, %v2519_v21, 0 }
 0x157   : > { %v895_v22 = vpop.permute.xlu1 %894  ;;  %v2484_v26 = vpop.permute.xlu0 %2483  ;;  %v2521_v46 = vld [vmem:[#allocation2 + $0x28] sm:$0xff] }
 0x158   : > { %v2543_v30 = vsel %vm3671_vm2, %v2484_v26, %v2542_v27  ;;  %v957_v55 = vsel %vm3439_vm8, %v895_v22, %v956_v54 }
 0x159   : > { %2544 = vst [vmem:[#allocation2 + $0x60] sm:$0xff] %v2543_v30  ;;  %3008 = vmatprep.subr.msk.bf16.mxu0 %vm199_vm0, %v2543_v30 }
 0x15a   : > { %2995 = vmatpush3.bf16.xpose.msra.mxu0 %v2590_v32 }
 0x15b   : > { %v2004_v36 = vpop.permute.xlu1 %2003  ;;  %v1697_v37 = vpop.permute.xlu0 %1696  ;;  %v2545_v61 = vld [vmem:[#allocation2 + $0x68] sm:$0xff] }
 0x15c   : > { %v2057_v38 = vsel %vm3582_vm14, %v2004_v36, %v1751_v35  ;;  %v1754_v50 = vsel %vm3575_vm13, %v1697_v37, %v1753_v25 }
 0x15d   : > { %2058 = vst [vmem:[#allocation2 + $0x30] sm:$0xff] %v2057_v38 }
 0x15f   : > { %v2201_v43 = vpop.permute.xlu1 %2200  ;;  %v2020_v48 = vpop.permute.xlu0 %2019 }
 0x160   : > { %2240 = vst.msk [vmem:[#allocation2 + $0x30] sm:$0xff] %vm2233_vm15, %v2201_v43  ;;  %v2081_v44 = vsel %vm3582_vm14, %v2020_v48, %v1775_v42 }
 0x161   : > { %2082 = vst [vmem:[#allocation2 + $0x70] sm:$0xff] %v2081_v44 }
 0x163   : > { %v2470_v45 = vpop.permute.xlu1 %2469  ;;  %v2217_v47 = vpop.permute.xlu0 %2216 }
 0x164   : > { %v2522_v53 = vsel %vm3671_vm2, %v2470_v45, %v2521_v46  ;;  %2248 = vst.msk [vmem:[#allocation2 + $0x70] sm:$0xff] %vm2233_vm15, %v2217_v47 }
 0x165   : > { %2523 = vst [vmem:[#allocation2 + $0x28] sm:$0xff] %v2522_v53  ;;  %v2593_v24 = vsel %vm199_vm0, %v2522_v53, 0 }
 0x167   : > { %v1214_v60 = vpop.permute.xlu1 %1213  ;;  %v2486_v56 = vpop.permute.xlu0 %2485  ;;  %v2524_v51 = vld [vmem:[#allocation2 + $0x30] sm:$0xff] }
 0x168   : > { %v1279_v57 = vsel %vm3453_vm9, %v1214_v60, %v957_v55  ;;  %v2546_v58 = vsel %vm3671_vm2, %v2486_v56, %v2545_v61 }
 0x169   : > { %1280 = vst [vmem:[#allocation2 + $0x78] sm:$0xff] %v1279_v57  ;;  %2547 = vst [vmem:[#allocation2 + $0x68] sm:$0xff] %v2546_v58  ;;  %3009 = vmatprep.subr.msk.bf16.mxu0 %vm199_vm0, %v2546_v58 }
 0x16a   : > { %2997 = vmatpush3.bf16.xpose.msra.mxu0 %v2593_v24 }
 0x16b   : > { %v1424_v59 = vpop.permute.xlu1 %1423  ;;  %v2006_v63 = vpop.permute.xlu0 %2005  ;;  %v2548_v5 = vld [vmem:[#allocation2 + $0x70] sm:$0xff] }
 0x16c   : > { %1457 = vst.msk [vmem:[#allocation2 + $0x78] sm:$0xff] %vm1441_vm10, %v1424_v59  ;;  %v2060_v62 = vsel %vm3582_vm14, %v2006_v63, %v1754_v50 }
 0x16d   : > { %2061 = vst [vmem:[#allocation2 + $0x38] sm:$0xff] %v2060_v62 }
 0x16f   : > { %v2472_v0 = vpop.permute.xlu1 %2471  ;;  %v2203_v2 = vpop.permute.xlu0 %2202 }
 0x170   : > { %v2525_v3 = vsel %vm3671_vm2, %v2472_v0, %v2524_v51  ;;  %2241 = vst.msk [vmem:[#allocation2 + $0x38] sm:$0xff] %vm2233_vm15, %v2203_v2 }
 0x171   : > { %2526 = vst [vmem:[#allocation2 + $0x30] sm:$0xff] %v2525_v3  ;;  %v2596_v20 = vsel %vm199_vm0, %v2525_v3, 0 }
 0x173   : > { %v2488_v4 = vpop.permute.xlu0 %2487  ;;  %v1713_v6 = vpop.permute.xlu1 %1712  ;;  %v1777_v39 = vld [vmem:[#allocation2 + $0x78] sm:$0xff] }
 0x174   : > { %v2549_v40 = vsel %vm3671_vm2, %v2488_v4, %v2548_v5  ;;  %v1778_v33 = vsel %vm3575_vm13, %v1713_v6, %v1777_v39 }
 0x175   : > { %2550 = vst [vmem:[#allocation2 + $0x70] sm:$0xff] %v2549_v40  ;;  %1779 = vst [vmem:[#allocation2 + $0x78] sm:$0xff] %v1778_v33  ;;  %3010 = vmatprep.subr.msk.bf16.mxu0 %vm199_vm0, %v2549_v40 }
 0x176   : > { %2999 = vmatpush3.bf16.xpose.msra.mxu0 %v2596_v20 }
 0x177   : > { %v2474_v7 = vpop.permute.xlu0 %2473  ;;  %v2527_v8 = vld [vmem:[#allocation2 + $0x38] sm:$0xff]  ;;  %3011 = vmatprep.subr.msk.bf16.mxu0 %vm199_vm0, %v1778_v33 }
 0x178   : > { %v2528_v9 = vsel %vm3671_vm2, %v2474_v7, %v2527_v8 }
 0x179   : > { %2529 = vst [vmem:[#allocation2 + $0x38] sm:$0xff] %v2528_v9  ;;  %v2599_v10 = vsel %vm199_vm0, %v2528_v9, 0 }
 0x17e   : > { %3001 = vmatpush3.bf16.xpose.msra.mxu0 %v2599_v10 }
 0x184   : > { %v2572_v31 = vpop.permute.xlu1 %2571 }
 0x185   : > { %3003 = vmatmul.mubr.msk.bf16.vlgmr.msra.gmra.mrb[0].mxu0 %vm199_vm0, %v3729_v49 }
 0x188   : > { %v2672_v52 = vpop.permute.xlu0 %2671 }
 0x258   : > { %v2659_v11 = vpop.f32.mrb[0].mxu0 }
 0x259   : > { %v2660_v12 = vadd.f32 %v2659_v11, %v2572_v31  ;;  %v2661_v13 = vpop.f32.mrb[1].mxu0 }
 0x25a   : > { %v2662_v14 = vadd.f32 %v2661_v13, %v2572_v31  ;;  %v2663_v28 = vpop.f32.mrb[2].mxu0 }
 0x25b   : > { %vm2667_vm3 = vcmp.gt.f32.partialorder %v2660_v12, 0.0  ;;  %v2674_v15 = vmul.f32 %v2672_v52, %v2660_v12  ;;  %v2664_v1 = vpop.f32.mrb[3].mxu0 }
 0x25c   : > { %vm2668_vm4 = vcmp.gt.f32.partialorder %v2662_v14, 0.0  ;;  %v2675_v23 = vmul.f32 %v2672_v52, %v2662_v14 }
 0x25d   : > { %v2676_v29 = vsel %vm2667_vm3, %v2660_v12, %v2674_v15 }
 0x25e   : > { %v2677_v16 = vsel %vm2668_vm4, %v2662_v14, %v2675_v23 }
 0x25f   : > { %v2985_v49 = vpack.c.bf16 %v2677_v16, %v2676_v29 }
 0x261   : > { %2686 = vst [vmem:[%s197_s13] sm:$0xff] %v2985_v49 }
 0x262 PF: > { %s14_s15 = sadd.s32 1, %s3175_s15  }
 0x263   : > { %p11_p4 = scmp.ge.s32.totalorder %s14_s15, 4  }
 0x265   :  { %13 = sbr.rel (!%p11_p4) target bundleno = 1 (0x1), region = 68 }

</bundles_post_ra>
